<compile_context>
chip_gen: v5e
topology: v5e:2x2
jax: 0.10.0
libtpu: 0.0.40
codegen_flags: <defaults>
</compile_context>

<pallas_src>
import functools

import jax
import jax.numpy as jnp
from jax.experimental import pallas as pl
from jax.experimental.pallas import tpu as pltpu


def _stage_uses_mxu(cin, cout, k):
    """im2col + MXU only pays once the contraction is deep and the output is wide."""
    return (cin * k * k >= 128) and (cout >= 32)


def _conv_bn_silu(a, w_ref, b_ref, mask_ref, W, K, use_mxu):
    """Conv(K, stride 1, 'same') + folded-BN bias + SiLU on a flat (Cin, N*H*W) activation.

    a        : (Cin, NL) f32 activation, all images flattened onto the lane axis.
    w_ref    : small path  -> (K*K*Cin, Cout, 1) f32 (BN scale folded), tap-major.
               MXU path    -> (Cout, K*K*Cin) bf16 (BN scale folded), tap-major.
    b_ref    : (Cout, 1) f32 folded-BN bias.
    mask_ref : (K*K, NL) f32 {0,1} border masks (precomputed in the wrapper).
    Returns (Cout, NL) f32 = SiLU(conv + bias).
    """
    cin, NL = a.shape
    r = K // 2
    cols = []
    acc = None
    for dy in range(K):
        for dx in range(K):
            dyo, dxo = dy - r, dx - r
            off = dyo * W + dxo                       # flat source offset
            t = dy * K + dx
            if off == 0:
                shifted = a
            else:
                # shifted[l] = a[l + off]; invalid / cross-image lanes zeroed by the mask.
                shifted = pltpu.roll(a, (-off) % NL, axis=1)
            if dyo != 0 or dxo != 0:
                shifted = shifted * mask_ref[t:t + 1, :]          # f32 0/1 multiply
            if use_mxu:
                cols.append(shifted.astype(jnp.bfloat16))
            else:
                # Small-C fast path: VPU multiply-accumulate, no im2col, no MXU.
                for c in range(cin):
                    wcol = w_ref[t * cin + c]                     # (Cout, 1) f32
                    term = wcol * shifted[c:c + 1, :]             # (Cout, NL)
                    acc = term if acc is None else acc + term
    if use_mxu:
        # TODO(synk): for production channel counts pad Cin to the sublane multiple so the
        # in-register stack needs no sublane shuffles.
        col = jnp.concatenate(cols, axis=0)                       # (K*K*Cin, NL) bf16
        acc = jnp.dot(w_ref[...], col, preferred_element_type=jnp.float32)
    y = acc + b_ref[...]                                          # folded-BN bias
    return y * jax.nn.sigmoid(y)                                  # SiLU (exp on the EUP)


def bottleneck_kernel(x_ref, w1_ref, b1_ref, w2_ref, b2_ref, mask_ref, o_ref,
                      *, W, K, add, use_mxu):
    x = x_ref[...]                                                # (C1, NL) f32
    y1 = _conv_bn_silu(x, w1_ref, b1_ref, mask_ref, W, K, use_mxu[0])   # stays in VMEM/vregs
    y2 = _conv_bn_silu(y1, w2_ref, b2_ref, mask_ref, W, K, use_mxu[1])  # (C2, NL)
    if add:
        y2 = y2 + x_ref[...]            # re-read the resident block; don't keep x live
    o_ref[...] = y2.astype(o_ref.dtype)


def _fold_weight_small(w_hwio, scale):
    """BN-folded weights for the VPU path: (K*K*Cin, Cout, 1) f32, tap-major leading axis."""
    k, _, cin, cout = w_hwio.shape
    wf = w_hwio * scale[None, None, None, :]                      # (k,k,cin,cout)
    return wf.reshape(k * k * cin, cout)[..., None].astype(jnp.float32)


def _fold_weight_mxu(w_hwio, scale):
    """BN-folded weights for the MXU path: (Cout, K*K*Cin) bf16, tap-major columns."""
    k, _, cin, cout = w_hwio.shape
    wf = w_hwio * scale[None, None, None, :]
    return jnp.transpose(wf, (3, 0, 1, 2)).reshape(cout, k * k * cin).astype(jnp.bfloat16)


def _make_masks(h, w, k, n):
    """(K*K, N*H*W) 0/1 f32 'same'-padding validity masks, hoisted out of the kernel."""
    L = h * w
    r = k // 2
    pos = jnp.arange(L, dtype=jnp.int32)
    xs = pos % w
    ys = pos // w
    rows = []
    for dy in range(k):
        for dx in range(k):
            dyo, dxo = dy - r, dx - r
            valid = ((xs + dxo >= 0) & (xs + dxo < w) &
                     (ys + dyo >= 0) & (ys + dyo < h))
            rows.append(valid.astype(jnp.float32))
    m = jnp.stack(rows, axis=0)                                   # (k*k, L), per image
    return jnp.tile(m, (1, n))                                    # (k*k, N*L)


def _full_block(a):
    nd = a.ndim
    return pl.BlockSpec(a.shape, lambda i, _nd=nd: (0,) * _nd)


def bottleneck_forward(x_nchw, params, add_shortcut):
    """Bottleneck.forward: x + cv2(cv1(x)) if add else cv2(cv1(x)). NCHW in / NCHW out."""
    (w1, s1, b1), (w2, s2, b2) = params
    n, c1, h, w = x_nchw.shape
    k = w1.shape[0]
    c_ = w1.shape[3]
    c2 = w2.shape[3]
    NL = n * h * w
    assert k % 2 == 1, "roll+mask padding assumes odd kernel size"
    # TODO(synk): grouped conv (g > 1), stride > 1 and dilation > 1 are not implemented
    # (Bottleneck uses g=1, s=1, d=1).

    mxu1 = _stage_uses_mxu(c1, c_, k)
    mxu2 = _stage_uses_mxu(c_, c2, k)

    w1m = _fold_weight_mxu(w1, s1) if mxu1 else _fold_weight_small(w1, s1)
    w2m = _fold_weight_mxu(w2, s2) if mxu2 else _fold_weight_small(w2, s2)
    b1c = b1.reshape(c_, 1).astype(jnp.float32)
    b2c = b2.reshape(c2, 1).astype(jnp.float32)
    masks = _make_masks(h, w, k, n)                               # (k*k, NL) f32

    # Batch folded onto the lane axis: (C, N*H*W).  N*H*W = 512 here -> unmasked vst.
    x_flat = jnp.transpose(x_nchw, (1, 0, 2, 3)).reshape(c1, NL)

    kernel = functools.partial(bottleneck_kernel, W=w, K=k,
                               add=add_shortcut, use_mxu=(mxu1, mxu2))
    # TODO(synk): for production sizes add an H-row grid axis (with +/- k//2 halo rows in
    # the input BlockSpec, rows*W a multiple of 128) marked "parallel" so v7x's two
    # TensorCores both get work, and set vmem_limit_bytes for its 64 MiB VMEM.
    out = pl.pallas_call(
        kernel,
        out_shape=jax.ShapeDtypeStruct((c2, NL), x_nchw.dtype),
        grid=(1,),
        in_specs=[
            _full_block(x_flat),
            _full_block(w1m),
            _full_block(b1c),
            _full_block(w2m),
            _full_block(b2c),
            _full_block(masks),
        ],
        out_specs=pl.BlockSpec((c2, NL), lambda i: (0, 0)),
        compiler_params=pltpu.CompilerParams(dimension_semantics=("arbitrary",)),
    )(x_flat, w1m, b1c, w2m, b2c, masks)
    return jnp.transpose(out.reshape(c2, n, h, w), (1, 0, 2, 3))


# ----------------------------- parameters & references ------------------------------

def fold_bn(gamma, beta, mean, var, eps=1e-5):
    scale = gamma / jnp.sqrt(var + eps)
    bias = beta - mean * scale
    return scale, bias


def make_conv_params(key, cin, cout, k):
    """Deterministic Conv2d weight (HWIO) + folded BatchNorm2d scale/bias."""
    kw, kg, kb, km, kv = jax.random.split(key, 5)
    fan_in = cin * k * k
    w = jax.random.normal(kw, (k, k, cin, cout), jnp.float32) * (1.0 / fan_in) ** 0.5
    gamma = jax.random.uniform(kg, (cout,), jnp.float32, 0.5, 1.5)
    beta = 0.1 * jax.random.normal(kb, (cout,), jnp.float32)
    mean = 0.1 * jax.random.normal(km, (cout,), jnp.float32)
    var = jax.random.uniform(kv, (cout,), jnp.float32, 0.5, 1.5)
    scale, bias = fold_bn(gamma, beta, mean, var)
    return w, scale, bias


def _ref_stage(x_nchw, w_hwio, scale, bias):
    wf = w_hwio * scale[None, None, None, :]
    y = jax.lax.conv_general_dilated(
        x_nchw, wf, window_strides=(1, 1), padding="SAME",
        dimension_numbers=("NCHW", "HWIO", "NCHW"),
        preferred_element_type=jnp.float32)
    y = y + bias[None, :, None, None]
    return y * jax.nn.sigmoid(y)


def _ref_bottleneck(x_nchw, params, add_shortcut):
    (w1, s1, b1), (w2, s2, b2) = params
    y = _ref_stage(_ref_stage(x_nchw, w1, s1, b1), w2, s2, b2)
    if add_shortcut:
        y = y + x_nchw
    return y


if __name__ == "__main__":
    key = jax.random.PRNGKey(0)
    kx, kp1, kp2 = jax.random.split(key, 3)

    # Bottleneck(c1=4, c2=4, shortcut=True, g=1, k=(3,3), e=0.5) -> c_ = 2
    N, C1, C2, H, W = 2, 4, 4, 16, 16
    e = 0.5
    C_ = int(C2 * e)
    K = 3
    add = True and (C1 == C2)

    x = jax.random.normal(kx, (N, C1, H, W), jnp.float32)  # NCHW, like the PyTorch input
    params = (make_conv_params(kp1, C1, C_, K),            # cv1
              make_conv_params(kp2, C_, C2, K))            # cv2 (g=1)

    out = bottleneck_forward(x, params, add)
    out = jax.block_until_ready(out)
    assert out.shape == (N, C2, H, W)

    # Small-channel path is full f32, so compare tightly against the f32 reference.
    ref = _ref_bottleneck(x, params, add)
    max_err = float(jnp.max(jnp.abs(out - ref)))
    assert jnp.allclose(out, ref, atol=2e-4, rtol=2e-4), \
        f"mismatch vs f32 reference (max abs err {max_err})"

    print("KERNEL_OK")
</pallas_src>

<mosaic_0001>
module attributes {stable_mosaic.version = 11 : i64} {
  func.func @bottleneck_kernel(%arg0: i32, %arg1: memref<4x512xf32, #tpu.memory_space<vmem>>, %arg2: memref<36x2x1xf32, #tpu.memory_space<vmem>>, %arg3: memref<2x1xf32, #tpu.memory_space<vmem>>, %arg4: memref<18x4x1xf32, #tpu.memory_space<vmem>>, %arg5: memref<4x1xf32, #tpu.memory_space<vmem>>, %arg6: memref<9x512xf32, #tpu.memory_space<vmem>>, %arg7: memref<4x512xf32, #tpu.memory_space<vmem>>) attributes {dimension_semantics = [#tpu.dimension_semantics<arbitrary>], iteration_bounds = array<i64: 1>, scalar_prefetch = 0 : i64, scratch_operands = 0 : i64, tpu.core_type = #tpu.core_type<tc>, window_params = [{pipeline_mode = #tpu.pipeline_mode<synchronous>, transform_indices = @transform_0, window_bounds = array<i64: 4, 512>}, {pipeline_mode = #tpu.pipeline_mode<synchronous>, transform_indices = @transform_1, window_bounds = array<i64: 36, 2, 1>}, {pipeline_mode = #tpu.pipeline_mode<synchronous>, transform_indices = @transform_2, window_bounds = array<i64: 2, 1>}, {pipeline_mode = #tpu.pipeline_mode<synchronous>, transform_indices = @transform_3, window_bounds = array<i64: 18, 4, 1>}, {pipeline_mode = #tpu.pipeline_mode<synchronous>, transform_indices = @transform_4, window_bounds = array<i64: 4, 1>}, {pipeline_mode = #tpu.pipeline_mode<synchronous>, transform_indices = @transform_5, window_bounds = array<i64: 9, 512>}, {pipeline_mode = #tpu.pipeline_mode<synchronous>, transform_indices = @transform_6, window_bounds = array<i64: 4, 512>}]} {
    %c0 = arith.constant 0 : index
    %c0_0 = arith.constant 0 : index
    %0 = vector.load %arg1[%c0, %c0_0] : memref<4x512xf32, #tpu.memory_space<vmem>>, vector<4x512xf32>
    %c17_i32 = arith.constant 17 : i32
    %1 = tpu.dynamic_rotate %0 by %c17_i32 dim 1 : vector<4x512xf32>, i32 -> vector<4x512xf32>
    %c0_1 = arith.constant 0 : index
    %c0_2 = arith.constant 0 : index
    %2 = vector.load %arg6[%c0_1, %c0_2] : memref<9x512xf32, #tpu.memory_space<vmem>>, vector<1x512xf32>
    %3 = vector.broadcast %2 : vector<1x512xf32> to vector<4x512xf32>
    %4 = arith.mulf %1, %3 : vector<4x512xf32>
    %c0_3 = arith.constant 0 : index
    %c0_4 = arith.constant 0 : index
    %c0_5 = arith.constant 0 : index
    %5 = vector.load %arg2[%c0_3, %c0_4, %c0_5] : memref<36x2x1xf32, #tpu.memory_space<vmem>>, vector<1x2x1xf32>
    %6 = vector.shape_cast %5 : vector<1x2x1xf32> to vector<2x1xf32>
    %7 = vector.extract_strided_slice %4 {offsets = [0, 0], sizes = [1, 512], strides = [1, 1]} : vector<4x512xf32> to vector<1x512xf32>
    %8 = vector.broadcast %6 : vector<2x1xf32> to vector<2x512xf32>
    %9 = vector.broadcast %7 : vector<1x512xf32> to vector<2x512xf32>
    %10 = arith.mulf %8, %9 : vector<2x512xf32>
    %c1 = arith.constant 1 : index
    %c0_6 = arith.constant 0 : index
    %c0_7 = arith.constant 0 : index
    %11 = vector.load %arg2[%c1, %c0_6, %c0_7] : memref<36x2x1xf32, #tpu.memory_space<vmem>>, vector<1x2x1xf32>
    %12 = vector.shape_cast %11 : vector<1x2x1xf32> to vector<2x1xf32>
    %13 = vector.extract_strided_slice %4 {offsets = [1, 0], sizes = [1, 512], strides = [1, 1]} : vector<4x512xf32> to vector<1x512xf32>
    %14 = vector.broadcast %12 : vector<2x1xf32> to vector<2x512xf32>
    %15 = vector.broadcast %13 : vector<1x512xf32> to vector<2x512xf32>
    %16 = arith.mulf %14, %15 : vector<2x512xf32>
    %17 = arith.addf %10, %16 : vector<2x512xf32>
    %c2 = arith.constant 2 : index
    %c0_8 = arith.constant 0 : index
    %c0_9 = arith.constant 0 : index
    %18 = vector.load %arg2[%c2, %c0_8, %c0_9] : memref<36x2x1xf32, #tpu.memory_space<vmem>>, vector<1x2x1xf32>
    %19 = vector.shape_cast %18 : vector<1x2x1xf32> to vector<2x1xf32>
    %20 = vector.extract_strided_slice %4 {offsets = [2, 0], sizes = [1, 512], strides = [1, 1]} : vector<4x512xf32> to vector<1x512xf32>
    %21 = vector.broadcast %19 : vector<2x1xf32> to vector<2x512xf32>
    %22 = vector.broadcast %20 : vector<1x512xf32> to vector<2x512xf32>
    %23 = arith.mulf %21, %22 : vector<2x512xf32>
    %24 = arith.addf %17, %23 : vector<2x512xf32>
    %c3 = arith.constant 3 : index
    %c0_10 = arith.constant 0 : index
    %c0_11 = arith.constant 0 : index
    %25 = vector.load %arg2[%c3, %c0_10, %c0_11] : memref<36x2x1xf32, #tpu.memory_space<vmem>>, vector<1x2x1xf32>
    %26 = vector.shape_cast %25 : vector<1x2x1xf32> to vector<2x1xf32>
    %27 = vector.extract_strided_slice %4 {offsets = [3, 0], sizes = [1, 512], strides = [1, 1]} : vector<4x512xf32> to vector<1x512xf32>
    %28 = vector.broadcast %26 : vector<2x1xf32> to vector<2x512xf32>
    %29 = vector.broadcast %27 : vector<1x512xf32> to vector<2x512xf32>
    %30 = arith.mulf %28, %29 : vector<2x512xf32>
    %31 = arith.addf %24, %30 : vector<2x512xf32>
    %c16_i32 = arith.constant 16 : i32
    %32 = tpu.dynamic_rotate %0 by %c16_i32 dim 1 : vector<4x512xf32>, i32 -> vector<4x512xf32>
    %c1_12 = arith.constant 1 : index
    %c0_13 = arith.constant 0 : index
    %33 = vector.load %arg6[%c1_12, %c0_13] : memref<9x512xf32, #tpu.memory_space<vmem>>, vector<1x512xf32>
    %34 = vector.broadcast %33 : vector<1x512xf32> to vector<4x512xf32>
    %35 = arith.mulf %32, %34 : vector<4x512xf32>
    %c4 = arith.constant 4 : index
    %c0_14 = arith.constant 0 : index
    %c0_15 = arith.constant 0 : index
    %36 = vector.load %arg2[%c4, %c0_14, %c0_15] : memref<36x2x1xf32, #tpu.memory_space<vmem>>, vector<1x2x1xf32>
    %37 = vector.shape_cast %36 : vector<1x2x1xf32> to vector<2x1xf32>
    %38 = vector.extract_strided_slice %35 {offsets = [0, 0], sizes = [1, 512], strides = [1, 1]} : vector<4x512xf32> to vector<1x512xf32>
    %39 = vector.broadcast %37 : vector<2x1xf32> to vector<2x512xf32>
    %40 = vector.broadcast %38 : vector<1x512xf32> to vector<2x512xf32>
    %41 = arith.mulf %39, %40 : vector<2x512xf32>
    %42 = arith.addf %31, %41 : vector<2x512xf32>
    %c5 = arith.constant 5 : index
    %c0_16 = arith.constant 0 : index
    %c0_17 = arith.constant 0 : index
    %43 = vector.load %arg2[%c5, %c0_16, %c0_17] : memref<36x2x1xf32, #tpu.memory_space<vmem>>, vector<1x2x1xf32>
    %44 = vector.shape_cast %43 : vector<1x2x1xf32> to vector<2x1xf32>
    %45 = vector.extract_strided_slice %35 {offsets = [1, 0], sizes = [1, 512], strides = [1, 1]} : vector<4x512xf32> to vector<1x512xf32>
    %46 = vector.broadcast %44 : vector<2x1xf32> to vector<2x512xf32>
    %47 = vector.broadcast %45 : vector<1x512xf32> to vector<2x512xf32>
    %48 = arith.mulf %46, %47 : vector<2x512xf32>
    %49 = arith.addf %42, %48 : vector<2x512xf32>
    %c6 = arith.constant 6 : index
    %c0_18 = arith.constant 0 : index
    %c0_19 = arith.constant 0 : index
    %50 = vector.load %arg2[%c6, %c0_18, %c0_19] : memref<36x2x1xf32, #tpu.memory_space<vmem>>, vector<1x2x1xf32>
    %51 = vector.shape_cast %50 : vector<1x2x1xf32> to vector<2x1xf32>
    %52 = vector.extract_strided_slice %35 {offsets = [2, 0], sizes = [1, 512], strides = [1, 1]} : vector<4x512xf32> to vector<1x512xf32>
    %53 = vector.broadcast %51 : vector<2x1xf32> to vector<2x512xf32>
    %54 = vector.broadcast %52 : vector<1x512xf32> to vector<2x512xf32>
    %55 = arith.mulf %53, %54 : vector<2x512xf32>
    %56 = arith.addf %49, %55 : vector<2x512xf32>
    %c7 = arith.constant 7 : index
    %c0_20 = arith.constant 0 : index
    %c0_21 = arith.constant 0 : index
    %57 = vector.load %arg2[%c7, %c0_20, %c0_21] : memref<36x2x1xf32, #tpu.memory_space<vmem>>, vector<1x2x1xf32>
    %58 = vector.shape_cast %57 : vector<1x2x1xf32> to vector<2x1xf32>
    %59 = vector.extract_strided_slice %35 {offsets = [3, 0], sizes = [1, 512], strides = [1, 1]} : vector<4x512xf32> to vector<1x512xf32>
    %60 = vector.broadcast %58 : vector<2x1xf32> to vector<2x512xf32>
    %61 = vector.broadcast %59 : vector<1x512xf32> to vector<2x512xf32>
    %62 = arith.mulf %60, %61 : vector<2x512xf32>
    %63 = arith.addf %56, %62 : vector<2x512xf32>
    %c15_i32 = arith.constant 15 : i32
    %64 = tpu.dynamic_rotate %0 by %c15_i32 dim 1 : vector<4x512xf32>, i32 -> vector<4x512xf32>
    %c2_22 = arith.constant 2 : index
    %c0_23 = arith.constant 0 : index
    %65 = vector.load %arg6[%c2_22, %c0_23] : memref<9x512xf32, #tpu.memory_space<vmem>>, vector<1x512xf32>
    %66 = vector.broadcast %65 : vector<1x512xf32> to vector<4x512xf32>
    %67 = arith.mulf %64, %66 : vector<4x512xf32>
    %c8 = arith.constant 8 : index
    %c0_24 = arith.constant 0 : index
    %c0_25 = arith.constant 0 : index
    %68 = vector.load %arg2[%c8, %c0_24, %c0_25] : memref<36x2x1xf32, #tpu.memory_space<vmem>>, vector<1x2x1xf32>
    %69 = vector.shape_cast %68 : vector<1x2x1xf32> to vector<2x1xf32>
    %70 = vector.extract_strided_slice %67 {offsets = [0, 0], sizes = [1, 512], strides = [1, 1]} : vector<4x512xf32> to vector<1x512xf32>
    %71 = vector.broadcast %69 : vector<2x1xf32> to vector<2x512xf32>
    %72 = vector.broadcast %70 : vector<1x512xf32> to vector<2x512xf32>
    %73 = arith.mulf %71, %72 : vector<2x512xf32>
    %74 = arith.addf %63, %73 : vector<2x512xf32>
    %c9 = arith.constant 9 : index
    %c0_26 = arith.constant 0 : index
    %c0_27 = arith.constant 0 : index
    %75 = vector.load %arg2[%c9, %c0_26, %c0_27] : memref<36x2x1xf32, #tpu.memory_space<vmem>>, vector<1x2x1xf32>
    %76 = vector.shape_cast %75 : vector<1x2x1xf32> to vector<2x1xf32>
    %77 = vector.extract_strided_slice %67 {offsets = [1, 0], sizes = [1, 512], strides = [1, 1]} : vector<4x512xf32> to vector<1x512xf32>
    %78 = vector.broadcast %76 : vector<2x1xf32> to vector<2x512xf32>
    %79 = vector.broadcast %77 : vector<1x512xf32> to vector<2x512xf32>
    %80 = arith.mulf %78, %79 : vector<2x512xf32>
    %81 = arith.addf %74, %80 : vector<2x512xf32>
    %c10 = arith.constant 10 : index
    %c0_28 = arith.constant 0 : index
    %c0_29 = arith.constant 0 : index
    %82 = vector.load %arg2[%c10, %c0_28, %c0_29] : memref<36x2x1xf32, #tpu.memory_space<vmem>>, vector<1x2x1xf32>
    %83 = vector.shape_cast %82 : vector<1x2x1xf32> to vector<2x1xf32>
    %84 = vector.extract_strided_slice %67 {offsets = [2, 0], sizes = [1, 512], strides = [1, 1]} : vector<4x512xf32> to vector<1x512xf32>
    %85 = vector.broadcast %83 : vector<2x1xf32> to vector<2x512xf32>
    %86 = vector.broadcast %84 : vector<1x512xf32> to vector<2x512xf32>
    %87 = arith.mulf %85, %86 : vector<2x512xf32>
    %88 = arith.addf %81, %87 : vector<2x512xf32>
    %c11 = arith.constant 11 : index
    %c0_30 = arith.constant 0 : index
    %c0_31 = arith.constant 0 : index
    %89 = vector.load %arg2[%c11, %c0_30, %c0_31] : memref<36x2x1xf32, #tpu.memory_space<vmem>>, vector<1x2x1xf32>
    %90 = vector.shape_cast %89 : vector<1x2x1xf32> to vector<2x1xf32>
    %91 = vector.extract_strided_slice %67 {offsets = [3, 0], sizes = [1, 512], strides = [1, 1]} : vector<4x512xf32> to vector<1x512xf32>
    %92 = vector.broadcast %90 : vector<2x1xf32> to vector<2x512xf32>
    %93 = vector.broadcast %91 : vector<1x512xf32> to vector<2x512xf32>
    %94 = arith.mulf %92, %93 : vector<2x512xf32>
    %95 = arith.addf %88, %94 : vector<2x512xf32>
    %c1_i32 = arith.constant 1 : i32
    %96 = tpu.dynamic_rotate %0 by %c1_i32 dim 1 : vector<4x512xf32>, i32 -> vector<4x512xf32>
    %c3_32 = arith.constant 3 : index
    %c0_33 = arith.constant 0 : index
    %97 = vector.load %arg6[%c3_32, %c0_33] : memref<9x512xf32, #tpu.memory_space<vmem>>, vector<1x512xf32>
    %98 = vector.broadcast %97 : vector<1x512xf32> to vector<4x512xf32>
    %99 = arith.mulf %96, %98 : vector<4x512xf32>
    %c12 = arith.constant 12 : index
    %c0_34 = arith.constant 0 : index
    %c0_35 = arith.constant 0 : index
    %100 = vector.load %arg2[%c12, %c0_34, %c0_35] : memref<36x2x1xf32, #tpu.memory_space<vmem>>, vector<1x2x1xf32>
    %101 = vector.shape_cast %100 : vector<1x2x1xf32> to vector<2x1xf32>
    %102 = vector.extract_strided_slice %99 {offsets = [0, 0], sizes = [1, 512], strides = [1, 1]} : vector<4x512xf32> to vector<1x512xf32>
    %103 = vector.broadcast %101 : vector<2x1xf32> to vector<2x512xf32>
    %104 = vector.broadcast %102 : vector<1x512xf32> to vector<2x512xf32>
    %105 = arith.mulf %103, %104 : vector<2x512xf32>
    %106 = arith.addf %95, %105 : vector<2x512xf32>
    %c13 = arith.constant 13 : index
    %c0_36 = arith.constant 0 : index
    %c0_37 = arith.constant 0 : index
    %107 = vector.load %arg2[%c13, %c0_36, %c0_37] : memref<36x2x1xf32, #tpu.memory_space<vmem>>, vector<1x2x1xf32>
    %108 = vector.shape_cast %107 : vector<1x2x1xf32> to vector<2x1xf32>
    %109 = vector.extract_strided_slice %99 {offsets = [1, 0], sizes = [1, 512], strides = [1, 1]} : vector<4x512xf32> to vector<1x512xf32>
    %110 = vector.broadcast %108 : vector<2x1xf32> to vector<2x512xf32>
    %111 = vector.broadcast %109 : vector<1x512xf32> to vector<2x512xf32>
    %112 = arith.mulf %110, %111 : vector<2x512xf32>
    %113 = arith.addf %106, %112 : vector<2x512xf32>
    %c14 = arith.constant 14 : index
    %c0_38 = arith.constant 0 : index
    %c0_39 = arith.constant 0 : index
    %114 = vector.load %arg2[%c14, %c0_38, %c0_39] : memref<36x2x1xf32, #tpu.memory_space<vmem>>, vector<1x2x1xf32>
    %115 = vector.shape_cast %114 : vector<1x2x1xf32> to vector<2x1xf32>
    %116 = vector.extract_strided_slice %99 {offsets = [2, 0], sizes = [1, 512], strides = [1, 1]} : vector<4x512xf32> to vector<1x512xf32>
    %117 = vector.broadcast %115 : vector<2x1xf32> to vector<2x512xf32>
    %118 = vector.broadcast %116 : vector<1x512xf32> to vector<2x512xf32>
    %119 = arith.mulf %117, %118 : vector<2x512xf32>
    %120 = arith.addf %113, %119 : vector<2x512xf32>
    %c15 = arith.constant 15 : index
    %c0_40 = arith.constant 0 : index
    %c0_41 = arith.constant 0 : index
    %121 = vector.load %arg2[%c15, %c0_40, %c0_41] : memref<36x2x1xf32, #tpu.memory_space<vmem>>, vector<1x2x1xf32>
    %122 = vector.shape_cast %121 : vector<1x2x1xf32> to vector<2x1xf32>
    %123 = vector.extract_strided_slice %99 {offsets = [3, 0], sizes = [1, 512], strides = [1, 1]} : vector<4x512xf32> to vector<1x512xf32>
    %124 = vector.broadcast %122 : vector<2x1xf32> to vector<2x512xf32>
    %125 = vector.broadcast %123 : vector<1x512xf32> to vector<2x512xf32>
    %126 = arith.mulf %124, %125 : vector<2x512xf32>
    %127 = arith.addf %120, %126 : vector<2x512xf32>
    %c16 = arith.constant 16 : index
    %c0_42 = arith.constant 0 : index
    %c0_43 = arith.constant 0 : index
    %128 = vector.load %arg2[%c16, %c0_42, %c0_43] : memref<36x2x1xf32, #tpu.memory_space<vmem>>, vector<1x2x1xf32>
    %129 = vector.shape_cast %128 : vector<1x2x1xf32> to vector<2x1xf32>
    %130 = vector.extract_strided_slice %0 {offsets = [0, 0], sizes = [1, 512], strides = [1, 1]} : vector<4x512xf32> to vector<1x512xf32>
    %131 = vector.broadcast %129 : vector<2x1xf32> to vector<2x512xf32>
    %132 = vector.broadcast %130 : vector<1x512xf32> to vector<2x512xf32>
    %133 = arith.mulf %131, %132 : vector<2x512xf32>
    %134 = arith.addf %127, %133 : vector<2x512xf32>
    %c17 = arith.constant 17 : index
    %c0_44 = arith.constant 0 : index
    %c0_45 = arith.constant 0 : index
    %135 = vector.load %arg2[%c17, %c0_44, %c0_45] : memref<36x2x1xf32, #tpu.memory_space<vmem>>, vector<1x2x1xf32>
    %136 = vector.shape_cast %135 : vector<1x2x1xf32> to vector<2x1xf32>
    %137 = vector.extract_strided_slice %0 {offsets = [1, 0], sizes = [1, 512], strides = [1, 1]} : vector<4x512xf32> to vector<1x512xf32>
    %138 = vector.broadcast %136 : vector<2x1xf32> to vector<2x512xf32>
    %139 = vector.broadcast %137 : vector<1x512xf32> to vector<2x512xf32>
    %140 = arith.mulf %138, %139 : vector<2x512xf32>
    %141 = arith.addf %134, %140 : vector<2x512xf32>
    %c18 = arith.constant 18 : index
    %c0_46 = arith.constant 0 : index
    %c0_47 = arith.constant 0 : index
    %142 = vector.load %arg2[%c18, %c0_46, %c0_47] : memref<36x2x1xf32, #tpu.memory_space<vmem>>, vector<1x2x1xf32>
    %143 = vector.shape_cast %142 : vector<1x2x1xf32> to vector<2x1xf32>
    %144 = vector.extract_strided_slice %0 {offsets = [2, 0], sizes = [1, 512], strides = [1, 1]} : vector<4x512xf32> to vector<1x512xf32>
    %145 = vector.broadcast %143 : vector<2x1xf32> to vector<2x512xf32>
    %146 = vector.broadcast %144 : vector<1x512xf32> to vector<2x512xf32>
    %147 = arith.mulf %145, %146 : vector<2x512xf32>
    %148 = arith.addf %141, %147 : vector<2x512xf32>
    %c19 = arith.constant 19 : index
    %c0_48 = arith.constant 0 : index
    %c0_49 = arith.constant 0 : index
    %149 = vector.load %arg2[%c19, %c0_48, %c0_49] : memref<36x2x1xf32, #tpu.memory_space<vmem>>, vector<1x2x1xf32>
    %150 = vector.shape_cast %149 : vector<1x2x1xf32> to vector<2x1xf32>
    %151 = vector.extract_strided_slice %0 {offsets = [3, 0], sizes = [1, 512], strides = [1, 1]} : vector<4x512xf32> to vector<1x512xf32>
    %152 = vector.broadcast %150 : vector<2x1xf32> to vector<2x512xf32>
    %153 = vector.broadcast %151 : vector<1x512xf32> to vector<2x512xf32>
    %154 = arith.mulf %152, %153 : vector<2x512xf32>
    %155 = arith.addf %148, %154 : vector<2x512xf32>
    %c511_i32 = arith.constant 511 : i32
    %156 = tpu.dynamic_rotate %0 by %c511_i32 dim 1 : vector<4x512xf32>, i32 -> vector<4x512xf32>
    %c5_50 = arith.constant 5 : index
    %c0_51 = arith.constant 0 : index
    %157 = vector.load %arg6[%c5_50, %c0_51] : memref<9x512xf32, #tpu.memory_space<vmem>>, vector<1x512xf32>
    %158 = vector.broadcast %157 : vector<1x512xf32> to vector<4x512xf32>
    %159 = arith.mulf %156, %158 : vector<4x512xf32>
    %c20 = arith.constant 20 : index
    %c0_52 = arith.constant 0 : index
    %c0_53 = arith.constant 0 : index
    %160 = vector.load %arg2[%c20, %c0_52, %c0_53] : memref<36x2x1xf32, #tpu.memory_space<vmem>>, vector<1x2x1xf32>
    %161 = vector.shape_cast %160 : vector<1x2x1xf32> to vector<2x1xf32>
    %162 = vector.extract_strided_slice %159 {offsets = [0, 0], sizes = [1, 512], strides = [1, 1]} : vector<4x512xf32> to vector<1x512xf32>
    %163 = vector.broadcast %161 : vector<2x1xf32> to vector<2x512xf32>
    %164 = vector.broadcast %162 : vector<1x512xf32> to vector<2x512xf32>
    %165 = arith.mulf %163, %164 : vector<2x512xf32>
    %166 = arith.addf %155, %165 : vector<2x512xf32>
    %c21 = arith.constant 21 : index
    %c0_54 = arith.constant 0 : index
    %c0_55 = arith.constant 0 : index
    %167 = vector.load %arg2[%c21, %c0_54, %c0_55] : memref<36x2x1xf32, #tpu.memory_space<vmem>>, vector<1x2x1xf32>
    %168 = vector.shape_cast %167 : vector<1x2x1xf32> to vector<2x1xf32>
    %169 = vector.extract_strided_slice %159 {offsets = [1, 0], sizes = [1, 512], strides = [1, 1]} : vector<4x512xf32> to vector<1x512xf32>
    %170 = vector.broadcast %168 : vector<2x1xf32> to vector<2x512xf32>
    %171 = vector.broadcast %169 : vector<1x512xf32> to vector<2x512xf32>
    %172 = arith.mulf %170, %171 : vector<2x512xf32>
    %173 = arith.addf %166, %172 : vector<2x512xf32>
    %c22 = arith.constant 22 : index
    %c0_56 = arith.constant 0 : index
    %c0_57 = arith.constant 0 : index
    %174 = vector.load %arg2[%c22, %c0_56, %c0_57] : memref<36x2x1xf32, #tpu.memory_space<vmem>>, vector<1x2x1xf32>
    %175 = vector.shape_cast %174 : vector<1x2x1xf32> to vector<2x1xf32>
    %176 = vector.extract_strided_slice %159 {offsets = [2, 0], sizes = [1, 512], strides = [1, 1]} : vector<4x512xf32> to vector<1x512xf32>
    %177 = vector.broadcast %175 : vector<2x1xf32> to vector<2x512xf32>
    %178 = vector.broadcast %176 : vector<1x512xf32> to vector<2x512xf32>
    %179 = arith.mulf %177, %178 : vector<2x512xf32>
    %180 = arith.addf %173, %179 : vector<2x512xf32>
    %c23 = arith.constant 23 : index
    %c0_58 = arith.constant 0 : index
    %c0_59 = arith.constant 0 : index
    %181 = vector.load %arg2[%c23, %c0_58, %c0_59] : memref<36x2x1xf32, #tpu.memory_space<vmem>>, vector<1x2x1xf32>
    %182 = vector.shape_cast %181 : vector<1x2x1xf32> to vector<2x1xf32>
    %183 = vector.extract_strided_slice %159 {offsets = [3, 0], sizes = [1, 512], strides = [1, 1]} : vector<4x512xf32> to vector<1x512xf32>
    %184 = vector.broadcast %182 : vector<2x1xf32> to vector<2x512xf32>
    %185 = vector.broadcast %183 : vector<1x512xf32> to vector<2x512xf32>
    %186 = arith.mulf %184, %185 : vector<2x512xf32>
    %187 = arith.addf %180, %186 : vector<2x512xf32>
    %c497_i32 = arith.constant 497 : i32
    %188 = tpu.dynamic_rotate %0 by %c497_i32 dim 1 : vector<4x512xf32>, i32 -> vector<4x512xf32>
    %c6_60 = arith.constant 6 : index
    %c0_61 = arith.constant 0 : index
    %189 = vector.load %arg6[%c6_60, %c0_61] : memref<9x512xf32, #tpu.memory_space<vmem>>, vector<1x512xf32>
    %190 = vector.broadcast %189 : vector<1x512xf32> to vector<4x512xf32>
    %191 = arith.mulf %188, %190 : vector<4x512xf32>
    %c24 = arith.constant 24 : index
    %c0_62 = arith.constant 0 : index
    %c0_63 = arith.constant 0 : index
    %192 = vector.load %arg2[%c24, %c0_62, %c0_63] : memref<36x2x1xf32, #tpu.memory_space<vmem>>, vector<1x2x1xf32>
    %193 = vector.shape_cast %192 : vector<1x2x1xf32> to vector<2x1xf32>
    %194 = vector.extract_strided_slice %191 {offsets = [0, 0], sizes = [1, 512], strides = [1, 1]} : vector<4x512xf32> to vector<1x512xf32>
    %195 = vector.broadcast %193 : vector<2x1xf32> to vector<2x512xf32>
    %196 = vector.broadcast %194 : vector<1x512xf32> to vector<2x512xf32>
    %197 = arith.mulf %195, %196 : vector<2x512xf32>
    %198 = arith.addf %187, %197 : vector<2x512xf32>
    %c25 = arith.constant 25 : index
    %c0_64 = arith.constant 0 : index
    %c0_65 = arith.constant 0 : index
    %199 = vector.load %arg2[%c25, %c0_64, %c0_65] : memref<36x2x1xf32, #tpu.memory_space<vmem>>, vector<1x2x1xf32>
    %200 = vector.shape_cast %199 : vector<1x2x1xf32> to vector<2x1xf32>
    %201 = vector.extract_strided_slice %191 {offsets = [1, 0], sizes = [1, 512], strides = [1, 1]} : vector<4x512xf32> to vector<1x512xf32>
    %202 = vector.broadcast %200 : vector<2x1xf32> to vector<2x512xf32>
    %203 = vector.broadcast %201 : vector<1x512xf32> to vector<2x512xf32>
    %204 = arith.mulf %202, %203 : vector<2x512xf32>
    %205 = arith.addf %198, %204 : vector<2x512xf32>
    %c26 = arith.constant 26 : index
    %c0_66 = arith.constant 0 : index
    %c0_67 = arith.constant 0 : index
    %206 = vector.load %arg2[%c26, %c0_66, %c0_67] : memref<36x2x1xf32, #tpu.memory_space<vmem>>, vector<1x2x1xf32>
    %207 = vector.shape_cast %206 : vector<1x2x1xf32> to vector<2x1xf32>
    %208 = vector.extract_strided_slice %191 {offsets = [2, 0], sizes = [1, 512], strides = [1, 1]} : vector<4x512xf32> to vector<1x512xf32>
    %209 = vector.broadcast %207 : vector<2x1xf32> to vector<2x512xf32>
    %210 = vector.broadcast %208 : vector<1x512xf32> to vector<2x512xf32>
    %211 = arith.mulf %209, %210 : vector<2x512xf32>
    %212 = arith.addf %205, %211 : vector<2x512xf32>
    %c27 = arith.constant 27 : index
    %c0_68 = arith.constant 0 : index
    %c0_69 = arith.constant 0 : index
    %213 = vector.load %arg2[%c27, %c0_68, %c0_69] : memref<36x2x1xf32, #tpu.memory_space<vmem>>, vector<1x2x1xf32>
    %214 = vector.shape_cast %213 : vector<1x2x1xf32> to vector<2x1xf32>
    %215 = vector.extract_strided_slice %191 {offsets = [3, 0], sizes = [1, 512], strides = [1, 1]} : vector<4x512xf32> to vector<1x512xf32>
    %216 = vector.broadcast %214 : vector<2x1xf32> to vector<2x512xf32>
    %217 = vector.broadcast %215 : vector<1x512xf32> to vector<2x512xf32>
    %218 = arith.mulf %216, %217 : vector<2x512xf32>
    %219 = arith.addf %212, %218 : vector<2x512xf32>
    %c496_i32 = arith.constant 496 : i32
    %220 = tpu.dynamic_rotate %0 by %c496_i32 dim 1 : vector<4x512xf32>, i32 -> vector<4x512xf32>
    %c7_70 = arith.constant 7 : index
    %c0_71 = arith.constant 0 : index
    %221 = vector.load %arg6[%c7_70, %c0_71] : memref<9x512xf32, #tpu.memory_space<vmem>>, vector<1x512xf32>
    %222 = vector.broadcast %221 : vector<1x512xf32> to vector<4x512xf32>
    %223 = arith.mulf %220, %222 : vector<4x512xf32>
    %c28 = arith.constant 28 : index
    %c0_72 = arith.constant 0 : index
    %c0_73 = arith.constant 0 : index
    %224 = vector.load %arg2[%c28, %c0_72, %c0_73] : memref<36x2x1xf32, #tpu.memory_space<vmem>>, vector<1x2x1xf32>
    %225 = vector.shape_cast %224 : vector<1x2x1xf32> to vector<2x1xf32>
    %226 = vector.extract_strided_slice %223 {offsets = [0, 0], sizes = [1, 512], strides = [1, 1]} : vector<4x512xf32> to vector<1x512xf32>
    %227 = vector.broadcast %225 : vector<2x1xf32> to vector<2x512xf32>
    %228 = vector.broadcast %226 : vector<1x512xf32> to vector<2x512xf32>
    %229 = arith.mulf %227, %228 : vector<2x512xf32>
    %230 = arith.addf %219, %229 : vector<2x512xf32>
    %c29 = arith.constant 29 : index
    %c0_74 = arith.constant 0 : index
    %c0_75 = arith.constant 0 : index
    %231 = vector.load %arg2[%c29, %c0_74, %c0_75] : memref<36x2x1xf32, #tpu.memory_space<vmem>>, vector<1x2x1xf32>
    %232 = vector.shape_cast %231 : vector<1x2x1xf32> to vector<2x1xf32>
    %233 = vector.extract_strided_slice %223 {offsets = [1, 0], sizes = [1, 512], strides = [1, 1]} : vector<4x512xf32> to vector<1x512xf32>
    %234 = vector.broadcast %232 : vector<2x1xf32> to vector<2x512xf32>
    %235 = vector.broadcast %233 : vector<1x512xf32> to vector<2x512xf32>
    %236 = arith.mulf %234, %235 : vector<2x512xf32>
    %237 = arith.addf %230, %236 : vector<2x512xf32>
    %c30 = arith.constant 30 : index
    %c0_76 = arith.constant 0 : index
    %c0_77 = arith.constant 0 : index
    %238 = vector.load %arg2[%c30, %c0_76, %c0_77] : memref<36x2x1xf32, #tpu.memory_space<vmem>>, vector<1x2x1xf32>
    %239 = vector.shape_cast %238 : vector<1x2x1xf32> to vector<2x1xf32>
    %240 = vector.extract_strided_slice %223 {offsets = [2, 0], sizes = [1, 512], strides = [1, 1]} : vector<4x512xf32> to vector<1x512xf32>
    %241 = vector.broadcast %239 : vector<2x1xf32> to vector<2x512xf32>
    %242 = vector.broadcast %240 : vector<1x512xf32> to vector<2x512xf32>
    %243 = arith.mulf %241, %242 : vector<2x512xf32>
    %244 = arith.addf %237, %243 : vector<2x512xf32>
    %c31 = arith.constant 31 : index
    %c0_78 = arith.constant 0 : index
    %c0_79 = arith.constant 0 : index
    %245 = vector.load %arg2[%c31, %c0_78, %c0_79] : memref<36x2x1xf32, #tpu.memory_space<vmem>>, vector<1x2x1xf32>
    %246 = vector.shape_cast %245 : vector<1x2x1xf32> to vector<2x1xf32>
    %247 = vector.extract_strided_slice %223 {offsets = [3, 0], sizes = [1, 512], strides = [1, 1]} : vector<4x512xf32> to vector<1x512xf32>
    %248 = vector.broadcast %246 : vector<2x1xf32> to vector<2x512xf32>
    %249 = vector.broadcast %247 : vector<1x512xf32> to vector<2x512xf32>
    %250 = arith.mulf %248, %249 : vector<2x512xf32>
    %251 = arith.addf %244, %250 : vector<2x512xf32>
    %c495_i32 = arith.constant 495 : i32
    %252 = tpu.dynamic_rotate %0 by %c495_i32 dim 1 : vector<4x512xf32>, i32 -> vector<4x512xf32>
    %c8_80 = arith.constant 8 : index
    %c0_81 = arith.constant 0 : index
    %253 = vector.load %arg6[%c8_80, %c0_81] : memref<9x512xf32, #tpu.memory_space<vmem>>, vector<1x512xf32>
    %254 = vector.broadcast %253 : vector<1x512xf32> to vector<4x512xf32>
    %255 = arith.mulf %252, %254 : vector<4x512xf32>
    %c32 = arith.constant 32 : index
    %c0_82 = arith.constant 0 : index
    %c0_83 = arith.constant 0 : index
    %256 = vector.load %arg2[%c32, %c0_82, %c0_83] : memref<36x2x1xf32, #tpu.memory_space<vmem>>, vector<1x2x1xf32>
    %257 = vector.shape_cast %256 : vector<1x2x1xf32> to vector<2x1xf32>
    %258 = vector.extract_strided_slice %255 {offsets = [0, 0], sizes = [1, 512], strides = [1, 1]} : vector<4x512xf32> to vector<1x512xf32>
    %259 = vector.broadcast %257 : vector<2x1xf32> to vector<2x512xf32>
    %260 = vector.broadcast %258 : vector<1x512xf32> to vector<2x512xf32>
    %261 = arith.mulf %259, %260 : vector<2x512xf32>
    %262 = arith.addf %251, %261 : vector<2x512xf32>
    %c33 = arith.constant 33 : index
    %c0_84 = arith.constant 0 : index
    %c0_85 = arith.constant 0 : index
    %263 = vector.load %arg2[%c33, %c0_84, %c0_85] : memref<36x2x1xf32, #tpu.memory_space<vmem>>, vector<1x2x1xf32>
    %264 = vector.shape_cast %263 : vector<1x2x1xf32> to vector<2x1xf32>
    %265 = vector.extract_strided_slice %255 {offsets = [1, 0], sizes = [1, 512], strides = [1, 1]} : vector<4x512xf32> to vector<1x512xf32>
    %266 = vector.broadcast %264 : vector<2x1xf32> to vector<2x512xf32>
    %267 = vector.broadcast %265 : vector<1x512xf32> to vector<2x512xf32>
    %268 = arith.mulf %266, %267 : vector<2x512xf32>
    %269 = arith.addf %262, %268 : vector<2x512xf32>
    %c34 = arith.constant 34 : index
    %c0_86 = arith.constant 0 : index
    %c0_87 = arith.constant 0 : index
    %270 = vector.load %arg2[%c34, %c0_86, %c0_87] : memref<36x2x1xf32, #tpu.memory_space<vmem>>, vector<1x2x1xf32>
    %271 = vector.shape_cast %270 : vector<1x2x1xf32> to vector<2x1xf32>
    %272 = vector.extract_strided_slice %255 {offsets = [2, 0], sizes = [1, 512], strides = [1, 1]} : vector<4x512xf32> to vector<1x512xf32>
    %273 = vector.broadcast %271 : vector<2x1xf32> to vector<2x512xf32>
    %274 = vector.broadcast %272 : vector<1x512xf32> to vector<2x512xf32>
    %275 = arith.mulf %273, %274 : vector<2x512xf32>
    %276 = arith.addf %269, %275 : vector<2x512xf32>
    %c35 = arith.constant 35 : index
    %c0_88 = arith.constant 0 : index
    %c0_89 = arith.constant 0 : index
    %277 = vector.load %arg2[%c35, %c0_88, %c0_89] : memref<36x2x1xf32, #tpu.memory_space<vmem>>, vector<1x2x1xf32>
    %278 = vector.shape_cast %277 : vector<1x2x1xf32> to vector<2x1xf32>
    %279 = vector.extract_strided_slice %255 {offsets = [3, 0], sizes = [1, 512], strides = [1, 1]} : vector<4x512xf32> to vector<1x512xf32>
    %280 = vector.broadcast %278 : vector<2x1xf32> to vector<2x512xf32>
    %281 = vector.broadcast %279 : vector<1x512xf32> to vector<2x512xf32>
    %282 = arith.mulf %280, %281 : vector<2x512xf32>
    %283 = arith.addf %276, %282 : vector<2x512xf32>
    %c0_90 = arith.constant 0 : index
    %c0_91 = arith.constant 0 : index
    %284 = vector.load %arg3[%c0_90, %c0_91] : memref<2x1xf32, #tpu.memory_space<vmem>>, vector<2x1xf32>
    %285 = vector.broadcast %284 : vector<2x1xf32> to vector<2x512xf32>
    %286 = arith.addf %283, %285 : vector<2x512xf32>
    %287 = arith.negf %286 : vector<2x512xf32>
    %288 = math.exp %287 : vector<2x512xf32>
    %cst = arith.constant 1.000000e+00 : f32
    %289 = vector.broadcast %cst : f32 to vector<2x512xf32>
    %290 = arith.addf %289, %288 : vector<2x512xf32>
    %291 = arith.divf %289, %290 : vector<2x512xf32>
    %292 = arith.mulf %286, %291 : vector<2x512xf32>
    %c17_i32_92 = arith.constant 17 : i32
    %293 = tpu.dynamic_rotate %292 by %c17_i32_92 dim 1 : vector<2x512xf32>, i32 -> vector<2x512xf32>
    %c0_93 = arith.constant 0 : index
    %c0_94 = arith.constant 0 : index
    %294 = vector.load %arg6[%c0_93, %c0_94] : memref<9x512xf32, #tpu.memory_space<vmem>>, vector<1x512xf32>
    %295 = vector.broadcast %294 : vector<1x512xf32> to vector<2x512xf32>
    %296 = arith.mulf %293, %295 : vector<2x512xf32>
    %c0_95 = arith.constant 0 : index
    %c0_96 = arith.constant 0 : index
    %c0_97 = arith.constant 0 : index
    %297 = vector.load %arg4[%c0_95, %c0_96, %c0_97] : memref<18x4x1xf32, #tpu.memory_space<vmem>>, vector<1x4x1xf32>
    %298 = vector.shape_cast %297 : vector<1x4x1xf32> to vector<4x1xf32>
    %299 = vector.extract_strided_slice %296 {offsets = [0, 0], sizes = [1, 512], strides = [1, 1]} : vector<2x512xf32> to vector<1x512xf32>
    %300 = vector.broadcast %298 : vector<4x1xf32> to vector<4x512xf32>
    %301 = vector.broadcast %299 : vector<1x512xf32> to vector<4x512xf32>
    %302 = arith.mulf %300, %301 : vector<4x512xf32>
    %c1_98 = arith.constant 1 : index
    %c0_99 = arith.constant 0 : index
    %c0_100 = arith.constant 0 : index
    %303 = vector.load %arg4[%c1_98, %c0_99, %c0_100] : memref<18x4x1xf32, #tpu.memory_space<vmem>>, vector<1x4x1xf32>
    %304 = vector.shape_cast %303 : vector<1x4x1xf32> to vector<4x1xf32>
    %305 = vector.extract_strided_slice %296 {offsets = [1, 0], sizes = [1, 512], strides = [1, 1]} : vector<2x512xf32> to vector<1x512xf32>
    %306 = vector.broadcast %304 : vector<4x1xf32> to vector<4x512xf32>
    %307 = vector.broadcast %305 : vector<1x512xf32> to vector<4x512xf32>
    %308 = arith.mulf %306, %307 : vector<4x512xf32>
    %309 = arith.addf %302, %308 : vector<4x512xf32>
    %c16_i32_101 = arith.constant 16 : i32
    %310 = tpu.dynamic_rotate %292 by %c16_i32_101 dim 1 : vector<2x512xf32>, i32 -> vector<2x512xf32>
    %c1_102 = arith.constant 1 : index
    %c0_103 = arith.constant 0 : index
    %311 = vector.load %arg6[%c1_102, %c0_103] : memref<9x512xf32, #tpu.memory_space<vmem>>, vector<1x512xf32>
    %312 = vector.broadcast %311 : vector<1x512xf32> to vector<2x512xf32>
    %313 = arith.mulf %310, %312 : vector<2x512xf32>
    %c2_104 = arith.constant 2 : index
    %c0_105 = arith.constant 0 : index
    %c0_106 = arith.constant 0 : index
    %314 = vector.load %arg4[%c2_104, %c0_105, %c0_106] : memref<18x4x1xf32, #tpu.memory_space<vmem>>, vector<1x4x1xf32>
    %315 = vector.shape_cast %314 : vector<1x4x1xf32> to vector<4x1xf32>
    %316 = vector.extract_strided_slice %313 {offsets = [0, 0], sizes = [1, 512], strides = [1, 1]} : vector<2x512xf32> to vector<1x512xf32>
    %317 = vector.broadcast %315 : vector<4x1xf32> to vector<4x512xf32>
    %318 = vector.broadcast %316 : vector<1x512xf32> to vector<4x512xf32>
    %319 = arith.mulf %317, %318 : vector<4x512xf32>
    %320 = arith.addf %309, %319 : vector<4x512xf32>
    %c3_107 = arith.constant 3 : index
    %c0_108 = arith.constant 0 : index
    %c0_109 = arith.constant 0 : index
    %321 = vector.load %arg4[%c3_107, %c0_108, %c0_109] : memref<18x4x1xf32, #tpu.memory_space<vmem>>, vector<1x4x1xf32>
    %322 = vector.shape_cast %321 : vector<1x4x1xf32> to vector<4x1xf32>
    %323 = vector.extract_strided_slice %313 {offsets = [1, 0], sizes = [1, 512], strides = [1, 1]} : vector<2x512xf32> to vector<1x512xf32>
    %324 = vector.broadcast %322 : vector<4x1xf32> to vector<4x512xf32>
    %325 = vector.broadcast %323 : vector<1x512xf32> to vector<4x512xf32>
    %326 = arith.mulf %324, %325 : vector<4x512xf32>
    %327 = arith.addf %320, %326 : vector<4x512xf32>
    %c15_i32_110 = arith.constant 15 : i32
    %328 = tpu.dynamic_rotate %292 by %c15_i32_110 dim 1 : vector<2x512xf32>, i32 -> vector<2x512xf32>
    %c2_111 = arith.constant 2 : index
    %c0_112 = arith.constant 0 : index
    %329 = vector.load %arg6[%c2_111, %c0_112] : memref<9x512xf32, #tpu.memory_space<vmem>>, vector<1x512xf32>
    %330 = vector.broadcast %329 : vector<1x512xf32> to vector<2x512xf32>
    %331 = arith.mulf %328, %330 : vector<2x512xf32>
    %c4_113 = arith.constant 4 : index
    %c0_114 = arith.constant 0 : index
    %c0_115 = arith.constant 0 : index
    %332 = vector.load %arg4[%c4_113, %c0_114, %c0_115] : memref<18x4x1xf32, #tpu.memory_space<vmem>>, vector<1x4x1xf32>
    %333 = vector.shape_cast %332 : vector<1x4x1xf32> to vector<4x1xf32>
    %334 = vector.extract_strided_slice %331 {offsets = [0, 0], sizes = [1, 512], strides = [1, 1]} : vector<2x512xf32> to vector<1x512xf32>
    %335 = vector.broadcast %333 : vector<4x1xf32> to vector<4x512xf32>
    %336 = vector.broadcast %334 : vector<1x512xf32> to vector<4x512xf32>
    %337 = arith.mulf %335, %336 : vector<4x512xf32>
    %338 = arith.addf %327, %337 : vector<4x512xf32>
    %c5_116 = arith.constant 5 : index
    %c0_117 = arith.constant 0 : index
    %c0_118 = arith.constant 0 : index
    %339 = vector.load %arg4[%c5_116, %c0_117, %c0_118] : memref<18x4x1xf32, #tpu.memory_space<vmem>>, vector<1x4x1xf32>
    %340 = vector.shape_cast %339 : vector<1x4x1xf32> to vector<4x1xf32>
    %341 = vector.extract_strided_slice %331 {offsets = [1, 0], sizes = [1, 512], strides = [1, 1]} : vector<2x512xf32> to vector<1x512xf32>
    %342 = vector.broadcast %340 : vector<4x1xf32> to vector<4x512xf32>
    %343 = vector.broadcast %341 : vector<1x512xf32> to vector<4x512xf32>
    %344 = arith.mulf %342, %343 : vector<4x512xf32>
    %345 = arith.addf %338, %344 : vector<4x512xf32>
    %c1_i32_119 = arith.constant 1 : i32
    %346 = tpu.dynamic_rotate %292 by %c1_i32_119 dim 1 : vector<2x512xf32>, i32 -> vector<2x512xf32>
    %c3_120 = arith.constant 3 : index
    %c0_121 = arith.constant 0 : index
    %347 = vector.load %arg6[%c3_120, %c0_121] : memref<9x512xf32, #tpu.memory_space<vmem>>, vector<1x512xf32>
    %348 = vector.broadcast %347 : vector<1x512xf32> to vector<2x512xf32>
    %349 = arith.mulf %346, %348 : vector<2x512xf32>
    %c6_122 = arith.constant 6 : index
    %c0_123 = arith.constant 0 : index
    %c0_124 = arith.constant 0 : index
    %350 = vector.load %arg4[%c6_122, %c0_123, %c0_124] : memref<18x4x1xf32, #tpu.memory_space<vmem>>, vector<1x4x1xf32>
    %351 = vector.shape_cast %350 : vector<1x4x1xf32> to vector<4x1xf32>
    %352 = vector.extract_strided_slice %349 {offsets = [0, 0], sizes = [1, 512], strides = [1, 1]} : vector<2x512xf32> to vector<1x512xf32>
    %353 = vector.broadcast %351 : vector<4x1xf32> to vector<4x512xf32>
    %354 = vector.broadcast %352 : vector<1x512xf32> to vector<4x512xf32>
    %355 = arith.mulf %353, %354 : vector<4x512xf32>
    %356 = arith.addf %345, %355 : vector<4x512xf32>
    %c7_125 = arith.constant 7 : index
    %c0_126 = arith.constant 0 : index
    %c0_127 = arith.constant 0 : index
    %357 = vector.load %arg4[%c7_125, %c0_126, %c0_127] : memref<18x4x1xf32, #tpu.memory_space<vmem>>, vector<1x4x1xf32>
    %358 = vector.shape_cast %357 : vector<1x4x1xf32> to vector<4x1xf32>
    %359 = vector.extract_strided_slice %349 {offsets = [1, 0], sizes = [1, 512], strides = [1, 1]} : vector<2x512xf32> to vector<1x512xf32>
    %360 = vector.broadcast %358 : vector<4x1xf32> to vector<4x512xf32>
    %361 = vector.broadcast %359 : vector<1x512xf32> to vector<4x512xf32>
    %362 = arith.mulf %360, %361 : vector<4x512xf32>
    %363 = arith.addf %356, %362 : vector<4x512xf32>
    %c8_128 = arith.constant 8 : index
    %c0_129 = arith.constant 0 : index
    %c0_130 = arith.constant 0 : index
    %364 = vector.load %arg4[%c8_128, %c0_129, %c0_130] : memref<18x4x1xf32, #tpu.memory_space<vmem>>, vector<1x4x1xf32>
    %365 = vector.shape_cast %364 : vector<1x4x1xf32> to vector<4x1xf32>
    %366 = vector.extract_strided_slice %292 {offsets = [0, 0], sizes = [1, 512], strides = [1, 1]} : vector<2x512xf32> to vector<1x512xf32>
    %367 = vector.broadcast %365 : vector<4x1xf32> to vector<4x512xf32>
    %368 = vector.broadcast %366 : vector<1x512xf32> to vector<4x512xf32>
    %369 = arith.mulf %367, %368 : vector<4x512xf32>
    %370 = arith.addf %363, %369 : vector<4x512xf32>
    %c9_131 = arith.constant 9 : index
    %c0_132 = arith.constant 0 : index
    %c0_133 = arith.constant 0 : index
    %371 = vector.load %arg4[%c9_131, %c0_132, %c0_133] : memref<18x4x1xf32, #tpu.memory_space<vmem>>, vector<1x4x1xf32>
    %372 = vector.shape_cast %371 : vector<1x4x1xf32> to vector<4x1xf32>
    %373 = vector.extract_strided_slice %292 {offsets = [1, 0], sizes = [1, 512], strides = [1, 1]} : vector<2x512xf32> to vector<1x512xf32>
    %374 = vector.broadcast %372 : vector<4x1xf32> to vector<4x512xf32>
    %375 = vector.broadcast %373 : vector<1x512xf32> to vector<4x512xf32>
    %376 = arith.mulf %374, %375 : vector<4x512xf32>
    %377 = arith.addf %370, %376 : vector<4x512xf32>
    %c511_i32_134 = arith.constant 511 : i32
    %378 = tpu.dynamic_rotate %292 by %c511_i32_134 dim 1 : vector<2x512xf32>, i32 -> vector<2x512xf32>
    %c5_135 = arith.constant 5 : index
    %c0_136 = arith.constant 0 : index
    %379 = vector.load %arg6[%c5_135, %c0_136] : memref<9x512xf32, #tpu.memory_space<vmem>>, vector<1x512xf32>
    %380 = vector.broadcast %379 : vector<1x512xf32> to vector<2x512xf32>
    %381 = arith.mulf %378, %380 : vector<2x512xf32>
    %c10_137 = arith.constant 10 : index
    %c0_138 = arith.constant 0 : index
    %c0_139 = arith.constant 0 : index
    %382 = vector.load %arg4[%c10_137, %c0_138, %c0_139] : memref<18x4x1xf32, #tpu.memory_space<vmem>>, vector<1x4x1xf32>
    %383 = vector.shape_cast %382 : vector<1x4x1xf32> to vector<4x1xf32>
    %384 = vector.extract_strided_slice %381 {offsets = [0, 0], sizes = [1, 512], strides = [1, 1]} : vector<2x512xf32> to vector<1x512xf32>
    %385 = vector.broadcast %383 : vector<4x1xf32> to vector<4x512xf32>
    %386 = vector.broadcast %384 : vector<1x512xf32> to vector<4x512xf32>
    %387 = arith.mulf %385, %386 : vector<4x512xf32>
    %388 = arith.addf %377, %387 : vector<4x512xf32>
    %c11_140 = arith.constant 11 : index
    %c0_141 = arith.constant 0 : index
    %c0_142 = arith.constant 0 : index
    %389 = vector.load %arg4[%c11_140, %c0_141, %c0_142] : memref<18x4x1xf32, #tpu.memory_space<vmem>>, vector<1x4x1xf32>
    %390 = vector.shape_cast %389 : vector<1x4x1xf32> to vector<4x1xf32>
    %391 = vector.extract_strided_slice %381 {offsets = [1, 0], sizes = [1, 512], strides = [1, 1]} : vector<2x512xf32> to vector<1x512xf32>
    %392 = vector.broadcast %390 : vector<4x1xf32> to vector<4x512xf32>
    %393 = vector.broadcast %391 : vector<1x512xf32> to vector<4x512xf32>
    %394 = arith.mulf %392, %393 : vector<4x512xf32>
    %395 = arith.addf %388, %394 : vector<4x512xf32>
    %c497_i32_143 = arith.constant 497 : i32
    %396 = tpu.dynamic_rotate %292 by %c497_i32_143 dim 1 : vector<2x512xf32>, i32 -> vector<2x512xf32>
    %c6_144 = arith.constant 6 : index
    %c0_145 = arith.constant 0 : index
    %397 = vector.load %arg6[%c6_144, %c0_145] : memref<9x512xf32, #tpu.memory_space<vmem>>, vector<1x512xf32>
    %398 = vector.broadcast %397 : vector<1x512xf32> to vector<2x512xf32>
    %399 = arith.mulf %396, %398 : vector<2x512xf32>
    %c12_146 = arith.constant 12 : index
    %c0_147 = arith.constant 0 : index
    %c0_148 = arith.constant 0 : index
    %400 = vector.load %arg4[%c12_146, %c0_147, %c0_148] : memref<18x4x1xf32, #tpu.memory_space<vmem>>, vector<1x4x1xf32>
    %401 = vector.shape_cast %400 : vector<1x4x1xf32> to vector<4x1xf32>
    %402 = vector.extract_strided_slice %399 {offsets = [0, 0], sizes = [1, 512], strides = [1, 1]} : vector<2x512xf32> to vector<1x512xf32>
    %403 = vector.broadcast %401 : vector<4x1xf32> to vector<4x512xf32>
    %404 = vector.broadcast %402 : vector<1x512xf32> to vector<4x512xf32>
    %405 = arith.mulf %403, %404 : vector<4x512xf32>
    %406 = arith.addf %395, %405 : vector<4x512xf32>
    %c13_149 = arith.constant 13 : index
    %c0_150 = arith.constant 0 : index
    %c0_151 = arith.constant 0 : index
    %407 = vector.load %arg4[%c13_149, %c0_150, %c0_151] : memref<18x4x1xf32, #tpu.memory_space<vmem>>, vector<1x4x1xf32>
    %408 = vector.shape_cast %407 : vector<1x4x1xf32> to vector<4x1xf32>
    %409 = vector.extract_strided_slice %399 {offsets = [1, 0], sizes = [1, 512], strides = [1, 1]} : vector<2x512xf32> to vector<1x512xf32>
    %410 = vector.broadcast %408 : vector<4x1xf32> to vector<4x512xf32>
    %411 = vector.broadcast %409 : vector<1x512xf32> to vector<4x512xf32>
    %412 = arith.mulf %410, %411 : vector<4x512xf32>
    %413 = arith.addf %406, %412 : vector<4x512xf32>
    %c496_i32_152 = arith.constant 496 : i32
    %414 = tpu.dynamic_rotate %292 by %c496_i32_152 dim 1 : vector<2x512xf32>, i32 -> vector<2x512xf32>
    %c7_153 = arith.constant 7 : index
    %c0_154 = arith.constant 0 : index
    %415 = vector.load %arg6[%c7_153, %c0_154] : memref<9x512xf32, #tpu.memory_space<vmem>>, vector<1x512xf32>
    %416 = vector.broadcast %415 : vector<1x512xf32> to vector<2x512xf32>
    %417 = arith.mulf %414, %416 : vector<2x512xf32>
    %c14_155 = arith.constant 14 : index
    %c0_156 = arith.constant 0 : index
    %c0_157 = arith.constant 0 : index
    %418 = vector.load %arg4[%c14_155, %c0_156, %c0_157] : memref<18x4x1xf32, #tpu.memory_space<vmem>>, vector<1x4x1xf32>
    %419 = vector.shape_cast %418 : vector<1x4x1xf32> to vector<4x1xf32>
    %420 = vector.extract_strided_slice %417 {offsets = [0, 0], sizes = [1, 512], strides = [1, 1]} : vector<2x512xf32> to vector<1x512xf32>
    %421 = vector.broadcast %419 : vector<4x1xf32> to vector<4x512xf32>
    %422 = vector.broadcast %420 : vector<1x512xf32> to vector<4x512xf32>
    %423 = arith.mulf %421, %422 : vector<4x512xf32>
    %424 = arith.addf %413, %423 : vector<4x512xf32>
    %c15_158 = arith.constant 15 : index
    %c0_159 = arith.constant 0 : index
    %c0_160 = arith.constant 0 : index
    %425 = vector.load %arg4[%c15_158, %c0_159, %c0_160] : memref<18x4x1xf32, #tpu.memory_space<vmem>>, vector<1x4x1xf32>
    %426 = vector.shape_cast %425 : vector<1x4x1xf32> to vector<4x1xf32>
    %427 = vector.extract_strided_slice %417 {offsets = [1, 0], sizes = [1, 512], strides = [1, 1]} : vector<2x512xf32> to vector<1x512xf32>
    %428 = vector.broadcast %426 : vector<4x1xf32> to vector<4x512xf32>
    %429 = vector.broadcast %427 : vector<1x512xf32> to vector<4x512xf32>
    %430 = arith.mulf %428, %429 : vector<4x512xf32>
    %431 = arith.addf %424, %430 : vector<4x512xf32>
    %c495_i32_161 = arith.constant 495 : i32
    %432 = tpu.dynamic_rotate %292 by %c495_i32_161 dim 1 : vector<2x512xf32>, i32 -> vector<2x512xf32>
    %c8_162 = arith.constant 8 : index
    %c0_163 = arith.constant 0 : index
    %433 = vector.load %arg6[%c8_162, %c0_163] : memref<9x512xf32, #tpu.memory_space<vmem>>, vector<1x512xf32>
    %434 = vector.broadcast %433 : vector<1x512xf32> to vector<2x512xf32>
    %435 = arith.mulf %432, %434 : vector<2x512xf32>
    %c16_164 = arith.constant 16 : index
    %c0_165 = arith.constant 0 : index
    %c0_166 = arith.constant 0 : index
    %436 = vector.load %arg4[%c16_164, %c0_165, %c0_166] : memref<18x4x1xf32, #tpu.memory_space<vmem>>, vector<1x4x1xf32>
    %437 = vector.shape_cast %436 : vector<1x4x1xf32> to vector<4x1xf32>
    %438 = vector.extract_strided_slice %435 {offsets = [0, 0], sizes = [1, 512], strides = [1, 1]} : vector<2x512xf32> to vector<1x512xf32>
    %439 = vector.broadcast %437 : vector<4x1xf32> to vector<4x512xf32>
    %440 = vector.broadcast %438 : vector<1x512xf32> to vector<4x512xf32>
    %441 = arith.mulf %439, %440 : vector<4x512xf32>
    %442 = arith.addf %431, %441 : vector<4x512xf32>
    %c17_167 = arith.constant 17 : index
    %c0_168 = arith.constant 0 : index
    %c0_169 = arith.constant 0 : index
    %443 = vector.load %arg4[%c17_167, %c0_168, %c0_169] : memref<18x4x1xf32, #tpu.memory_space<vmem>>, vector<1x4x1xf32>
    %444 = vector.shape_cast %443 : vector<1x4x1xf32> to vector<4x1xf32>
    %445 = vector.extract_strided_slice %435 {offsets = [1, 0], sizes = [1, 512], strides = [1, 1]} : vector<2x512xf32> to vector<1x512xf32>
    %446 = vector.broadcast %444 : vector<4x1xf32> to vector<4x512xf32>
    %447 = vector.broadcast %445 : vector<1x512xf32> to vector<4x512xf32>
    %448 = arith.mulf %446, %447 : vector<4x512xf32>
    %449 = arith.addf %442, %448 : vector<4x512xf32>
    %c0_170 = arith.constant 0 : index
    %c0_171 = arith.constant 0 : index
    %450 = vector.load %arg5[%c0_170, %c0_171] : memref<4x1xf32, #tpu.memory_space<vmem>>, vector<4x1xf32>
    %451 = vector.broadcast %450 : vector<4x1xf32> to vector<4x512xf32>
    %452 = arith.addf %449, %451 : vector<4x512xf32>
    %453 = arith.negf %452 : vector<4x512xf32>
    %454 = math.exp %453 : vector<4x512xf32>
    %cst_172 = arith.constant 1.000000e+00 : f32
    %455 = vector.broadcast %cst_172 : f32 to vector<4x512xf32>
    %456 = arith.addf %455, %454 : vector<4x512xf32>
    %457 = arith.divf %455, %456 : vector<4x512xf32>
    %458 = arith.mulf %452, %457 : vector<4x512xf32>
    %c0_173 = arith.constant 0 : index
    %c0_174 = arith.constant 0 : index
    %459 = vector.load %arg1[%c0_173, %c0_174] : memref<4x512xf32, #tpu.memory_space<vmem>>, vector<4x512xf32>
    %460 = arith.addf %458, %459 : vector<4x512xf32>
    %c0_175 = arith.constant 0 : index
    %c0_176 = arith.constant 0 : index
    %461 = vector.load %arg7[%c0_175, %c0_176] : memref<4x512xf32, #tpu.memory_space<vmem>>, vector<4x512xf32>
    tpu.vector_store %arg7[%c0_175, %c0_176], %460 {strides = array<i32>} : memref<4x512xf32, #tpu.memory_space<vmem>>, vector<4x512xf32>,
    return
  }
  func.func @transform_0(%arg0: i32) -> (i32, i32) {
    %c0_i32 = arith.constant 0 : i32
    %c0_i32_0 = arith.constant 0 : i32
    %c0_i32_1 = arith.constant 0 : i32
    return %c0_i32, %c0_i32_0 : i32, i32
  }
  func.func @transform_1(%arg0: i32) -> (i32, i32, i32) {
    %c0_i32 = arith.constant 0 : i32
    %c0_i32_0 = arith.constant 0 : i32
    %c0_i32_1 = arith.constant 0 : i32
    %c0_i32_2 = arith.constant 0 : i32
    return %c0_i32, %c0_i32_0, %c0_i32_1 : i32, i32, i32
  }
  func.func @transform_2(%arg0: i32) -> (i32, i32) {
    %c0_i32 = arith.constant 0 : i32
    %c0_i32_0 = arith.constant 0 : i32
    %c0_i32_1 = arith.constant 0 : i32
    return %c0_i32, %c0_i32_0 : i32, i32
  }
  func.func @transform_3(%arg0: i32) -> (i32, i32, i32) {
    %c0_i32 = arith.constant 0 : i32
    %c0_i32_0 = arith.constant 0 : i32
    %c0_i32_1 = arith.constant 0 : i32
    %c0_i32_2 = arith.constant 0 : i32
    return %c0_i32, %c0_i32_0, %c0_i32_1 : i32, i32, i32
  }
  func.func @transform_4(%arg0: i32) -> (i32, i32) {
    %c0_i32 = arith.constant 0 : i32
    %c0_i32_0 = arith.constant 0 : i32
    %c0_i32_1 = arith.constant 0 : i32
    return %c0_i32, %c0_i32_0 : i32, i32
  }
  func.func @transform_5(%arg0: i32) -> (i32, i32) {
    %c0_i32 = arith.constant 0 : i32
    %c0_i32_0 = arith.constant 0 : i32
    %c0_i32_1 = arith.constant 0 : i32
    return %c0_i32, %c0_i32_0 : i32, i32
  }
  func.func @transform_6(%arg0: i32) -> (i32, i32) {
    %c0_i32 = arith.constant 0 : i32
    %c0_i32_0 = arith.constant 0 : i32
    %c0_i32_1 = arith.constant 0 : i32
    return %c0_i32, %c0_i32_0 : i32, i32
  }
}

</mosaic_0001>

<bundles_post_ra>
// kernel: tpu_custom_call.1
= control target key start
LH: loop header
LB: loop body
LE: loop exit
PB: predicated region body
PF: predicated region fallthrough
CT: control target
= control target key end

     0   :  { %v1879_v3 = vmov 0   ;;  %s3083_s0 = inlined_call_operand.vmem [shape: f32[4,512], index: 0, kind: input, shape index: {}]   ;;  %s3084_s1 = inlined_call_operand.vmem [shape: f32[36,2,1], index: 1, kind: input, shape index: {}]   ;;  %s3085_s2 = inlined_call_operand.vmem [shape: f32[2,1], index: 2, kind: input, shape index: {}]   ;;  %s3086_s3 = inlined_call_operand.vmem [shape: f32[18,4,1], index: 3, kind: input, shape index: {}]   ;;  %s3087_s4 = inlined_call_operand.vmem [shape: f32[4,1], index: 4, kind: input, shape index: {}]   ;;  %s3088_s5 = inlined_call_operand.vmem [shape: f32[9,512], index: 5, kind: input, shape index: {}]   ;;  %s3089_s6 = inlined_call_operand.hbm [shape: f32[4,512], index: 6, kind: output, shape index: {}]  }
   0x1   :  { %v68_v0 = vld [vmem:[%s3084_s1] sm:$0x3]  ;;  %v1930_v1 = vld [vmem:[%s3083_s0 + $0x8] sm:$0xff]  ;;  %1818 = vset.pattern.permute.xlu2 %v1879_v3  ;;  %1820 = vset.pattern.permute.xlu1 %v1879_v3 }
   0x2   :  { %v1935_v2 = vld [vmem:[%s3083_s0] sm:$0xff]  ;;  %30 = vst [vmem:[#allocation1 + $0x10] ss:$2 sm:$0xff] %v1930_v1  ;;  %71 = vperm.xlu2 %1818, %v68_v0   ;;  %1819 = vset.pattern.permute.xlu0 %v1879_v3 }
   0x3   :  { %28 = vst [vmem:[#allocation1] ss:$2 sm:$0xff] %v1935_v2 }
   0x4   :  { %11 = vsyncpa [#allocation3], 0  ;;  %v1741_v4 = vld [vmem:[%s3084_s1 + $0x2] sm:$0x3]  ;;  %s1880_s29 = smov 17   ;;  %s1881_s0 = smov 16   ;;  %v47_v59 = vlaneseq }
   0x5   :  { %v1743_v13 = vld [vmem:[%s3084_s1 + $0x6] sm:$0x3]  ;;  %v1742_v14 = vld [vmem:[%s3084_s1 + $0x4] sm:$0x3]  ;;  %v1746_v19 = vld [vmem:[%s3084_s1 + $0xa] sm:$0x3] }
   0x6   :  { %v1745_v20 = vld [vmem:[%s3084_s1 + $0x8] sm:$0x3]  ;;  %v1747_v21 = vld [vmem:[%s3084_s1 + $0xc] sm:$0x3]  ;;  %s1882_s16 = smov 15   ;;  %s1883_s27 = smov 1  }
   0x7   :  { %v1748_v24 = vld [vmem:[%s3084_s1 + $0xe] sm:$0x3]  ;;  %v1750_v27 = vld [vmem:[%s3084_s1 + $0x10] sm:$0x3]  ;;  %v1752_v28 = vld [vmem:[%s3084_s1 + $0x14] sm:$0x3] }
   0x8   :  { %v1751_v29 = vld [vmem:[%s3084_s1 + $0x12] sm:$0x3]  ;;  %v1753_v30 = vld [vmem:[%s3084_s1 + $0x16] sm:$0x3]  ;;  %v1755_v31 = vld [vmem:[%s3084_s1 + $0x18] sm:$0x3] }
   0x9   :  { %v33_v5 = vld.sshfl [vmem:[#allocation1 + $0x10] sm:$0xff pattern:$0x75316420]  ;;  %v34_v6 = vld.sshfl [vmem:[#allocation1 + $0x18] sm:$0xff pattern:$0x75316420] }
   0xa   :  { %43 = vrot.lane.b32.xlu1 %v33_v5, %s1880_s29  ;;  %v31_v7 = vld.sshfl [vmem:[#allocation1] sm:$0xff pattern:$0x75316420]  ;;  %141 = vst [vmem:[#allocation1 + $0x10] ss:$2 sm:$0xff] %v1930_v1  ;;  %86 = vperm.xlu2 %1818, %v1741_v4   ;;  %s1884_s22 = smov 127  }
   0xb   :  { %39 = vrot.lane.b32.xlu0 %v31_v7, %s1880_s29  ;;  %v32_v8 = vld.sshfl [vmem:[#allocation1 + $0x8] sm:$0xff pattern:$0x75316420]  ;;  %v1756_v34 = vld [vmem:[%s3084_s1 + $0x1a] sm:$0x3]  ;;  %s1885_s9 = smov 113  }
   0xc   :  { %139 = vst [vmem:[#allocation1] ss:$2 sm:$0xff] %v1935_v2  ;;  %v1758_v35 = vld [vmem:[%s3084_s1 + $0x1e] sm:$0x3]  ;;  %v1757_v38 = vld [vmem:[%s3084_s1 + $0x1c] sm:$0x3] }
   0xd   :  { %v1759_v39 = vld [vmem:[%s3084_s1 + $0x20] sm:$0x3]  ;;  %v1761_v40 = vld [vmem:[%s3084_s1 + $0x24] sm:$0x3]  ;;  %v1760_v44 = vld [vmem:[%s3084_s1 + $0x22] sm:$0x3] }
   0xe   :  { %v1762_v45 = vld [vmem:[%s3084_s1 + $0x26] sm:$0x3]  ;;  %v1764_v49 = vld [vmem:[%s3084_s1 + $0x28] sm:$0x3]  ;;  %v1765_v51 = vld [vmem:[%s3084_s1 + $0x2a] sm:$0x3] }
   0xf   :  { %v1767_v52 = vld [vmem:[%s3084_s1 + $0x2e] sm:$0x3]  ;;  %v1766_v56 = vld [vmem:[%s3084_s1 + $0x2c] sm:$0x3]  ;;  %v2060_v63 = vand.u32 127, %v47_v59  ;;  %s1886_s21 = smov 112  }
  0x10   :  { %v2065_v0 = vld [vmem:[%s3088_s5] ss:$8 sm:$0xf]  ;;  %v1770_v3 = vld [vmem:[%s3084_s1 + $0x32] sm:$0x3]  ;;  %s1887_s14 = smov 111  }
  0x11   :  { %v144_v9 = vld.sshfl [vmem:[#allocation1 + $0x10] sm:$0xff pattern:$0x75316420]  ;;  %v145_v10 = vld.sshfl [vmem:[#allocation1 + $0x18] sm:$0xff pattern:$0x75316420] }
  0x12   :  { %45 = vrot.lane.b32.xlu1 %v34_v6, %s1880_s29  ;;  %256 = vst [vmem:[#allocation1 + $0x10] ss:$2 sm:$0xff] %v1930_v1  ;;  %vm49_vm0 = vcmp.lt.s32.totalorder %v2060_v63, 17  ;;  %v56_v4 = vperm.slane %v2065_v0, 0  ;;  %v59_v5 = vperm.slane %v2065_v0, 3  ;;  %v57_v6 = vperm.slane %v2065_v0, 1 }
  0x13   :  { %41 = vrot.lane.b32.xlu0 %v32_v8, %s1880_s29  ;;  %v142_v11 = vld.sshfl [vmem:[#allocation1] sm:$0xff pattern:$0x75316420]  ;;  %v143_v12 = vld.sshfl [vmem:[#allocation1 + $0x8] sm:$0xff pattern:$0x75316420] }
  0x14   :  { %150 = vrot.lane.b32.xlu2 %v142_v11, %s1881_s0  ;;  %254 = vst [vmem:[#allocation1] ss:$2 sm:$0xff] %v1935_v2  ;;  %v58_v7 = vperm.slane %v2065_v0, 2  ;;  %vm273_vm1 = vcmp.lt.s32.totalorder %v2060_v63, 15  ;;  %vm158_vm2 = vcmp.lt.s32.totalorder %v2060_v63, 16  ;;  %vm3109_vm3 = vcmp.lt.s32.totalorder %v2060_v63, 1 }
  0x15   :  { %vm3108_vm4 = vcmp.lt.s32.totalorder %v2060_v63, 127  ;;  %vm3107_vm5 = vcmp.lt.s32.totalorder %v2060_v63, 113  ;;  %vm3106_vm6 = vcmp.lt.s32.totalorder %v2060_v63, 112  ;;  %vm3105_vm7 = vcmp.lt.s32.totalorder %v2060_v63, 111 }
  0x19   :  { %v260_v15 = vld.sshfl [vmem:[#allocation1 + $0x18] sm:$0xff pattern:$0x75316420]  ;;  %v259_v16 = vld.sshfl [vmem:[#allocation1 + $0x10] sm:$0xff pattern:$0x75316420] }
  0x1a   :  { %124 = vperm.xlu1 %1820, %v1743_v13   ;;  %371 = vst [vmem:[#allocation1 + $0x10] ss:$2 sm:$0xff] %v1930_v1 }
  0x1b   :  { %105 = vperm.xlu0 %1819, %v1742_v14   ;;  %v257_v17 = vld.sshfl [vmem:[#allocation1] sm:$0xff pattern:$0x75316420]  ;;  %v258_v18 = vld.sshfl [vmem:[#allocation1 + $0x8] sm:$0xff pattern:$0x75316420] }
  0x1c   :  { %154 = vrot.lane.b32.xlu2 %v144_v9, %s1881_s0  ;;  %369 = vst [vmem:[#allocation1] ss:$2 sm:$0xff] %v1935_v2  ;;  %v2080_v9 = vld [vmem:[%s3088_s5 + $0x2] ss:$8 sm:$0xf] }
  0x21   :  { %v374_v25 = vld.sshfl [vmem:[#allocation1 + $0x10] sm:$0xff pattern:$0x75316420]  ;;  %v375_v26 = vld.sshfl [vmem:[#allocation1 + $0x18] sm:$0xff pattern:$0x75316420] }
  0x22   :  { %152 = vrot.lane.b32.xlu1 %v143_v12, %s1881_s0  ;;  %594 = vst [vmem:[#allocation1 + $0x10] ss:$2 sm:$0xff] %v1930_v1 }
  0x23   :  { %156 = vrot.lane.b32.xlu0 %v145_v10, %s1881_s0  ;;  %v373_v22 = vld.sshfl [vmem:[#allocation1 + $0x8] sm:$0xff pattern:$0x75316420]  ;;  %v372_v23 = vld.sshfl [vmem:[#allocation1] sm:$0xff pattern:$0x75316420] }
  0x24   :  { %201 = vperm.xlu2 %1818, %v1746_v19   ;;  %592 = vst [vmem:[#allocation1] ss:$2 sm:$0xff] %v1935_v2 }
  0x29   :  { %v597_v36 = vld.sshfl [vmem:[#allocation1 + $0x10] sm:$0xff pattern:$0x75316420]  ;;  %v598_v37 = vld.sshfl [vmem:[#allocation1 + $0x18] sm:$0xff pattern:$0x75316420] }
  0x2a   :  { %182 = vperm.xlu1 %1820, %v1745_v20   ;;  %709 = vst [vmem:[#allocation1 + $0x10] ss:$2 sm:$0xff] %v1930_v1  ;;  %v1769_v20 = vld [vmem:[%s3084_s1 + $0x30] sm:$0x3] }
  0x2b   :  { %220 = vperm.xlu0 %1819, %v1747_v21   ;;  %v596_v32 = vld.sshfl [vmem:[#allocation1 + $0x8] sm:$0xff pattern:$0x75316420]  ;;  %v595_v33 = vld.sshfl [vmem:[#allocation1] sm:$0xff pattern:$0x75316420] }
  0x2c   :  { %265 = vrot.lane.b32.xlu2 %v257_v17, %s1882_s16  ;;  %707 = vst [vmem:[#allocation1] ss:$2 sm:$0xff] %v1935_v2  ;;  %v281_v21 = vperm.slane %v2080_v9, 0 }
  0x31   :  { %v712_v46 = vld.sshfl [vmem:[#allocation1 + $0x10] sm:$0xff pattern:$0x75316420]  ;;  %v713_v47 = vld.sshfl [vmem:[#allocation1 + $0x18] sm:$0xff pattern:$0x75316420] }
  0x32   :  { %239 = vperm.xlu1 %1820, %v1748_v24   ;;  %824 = vst [vmem:[#allocation1 + $0x10] ss:$2 sm:$0xff] %v1930_v1 }
  0x33   :  { %267 = vrot.lane.b32.xlu0 %v258_v18, %s1882_s16  ;;  %v710_v42 = vld.sshfl [vmem:[#allocation1] sm:$0xff pattern:$0x75316420]  ;;  %v711_v43 = vld.sshfl [vmem:[#allocation1 + $0x8] sm:$0xff pattern:$0x75316420] }
  0x34   :  { %271 = vrot.lane.b32.xlu2 %v260_v15, %s1882_s16  ;;  %822 = vst [vmem:[#allocation1] ss:$2 sm:$0xff] %v1935_v2 }
  0x39   :  { %v2051_v57 = vld.sshfl [vmem:[#allocation1 + $0x18] sm:$0xff pattern:$0x75316420]  ;;  %v2053_v58 = vld.sshfl [vmem:[#allocation1 + $0x10] sm:$0xff pattern:$0x75316420] }
  0x3a   :  { %269 = vrot.lane.b32.xlu1 %v259_v16, %s1882_s16  ;;  %939 = vst [vmem:[#allocation1 + $0x10] ss:$2 sm:$0xff] %v1930_v1 }
  0x3b   :  { %297 = vperm.xlu0 %1819, %v1750_v27   ;;  %v825_v53 = vld.sshfl [vmem:[#allocation1] sm:$0xff pattern:$0x75316420]  ;;  %v2043_v54 = vld.sshfl [vmem:[#allocation1 + $0x8] sm:$0xff pattern:$0x75316420] }
  0x3c   :  { %335 = vperm.xlu2 %1818, %v1752_v28   ;;  %937 = vst [vmem:[#allocation1] ss:$2 sm:$0xff] %v1935_v2 }
  0x42   :  { %316 = vperm.xlu1 %1820, %v1751_v29  }
  0x43   :  { %354 = vperm.xlu0 %1819, %v1753_v30  }
  0x44   :  { %382 = vrot.lane.b32.xlu2 %v373_v22, %s1883_s27 }
  0x4a   :  { %380 = vrot.lane.b32.xlu1 %v372_v23, %s1883_s27 }
  0x4b   :  { %384 = vrot.lane.b32.xlu0 %v374_v25, %s1883_s27 }
  0x4c   :  { %412 = vperm.xlu2 %1818, %v1755_v31  }
  0x52   :  { %386 = vrot.lane.b32.xlu1 %v375_v26, %s1883_s27  ;;  %v1771_v26 = vld [vmem:[%s3084_s1 + $0x34] sm:$0x3] }
  0x53   :  { %431 = vperm.xlu0 %1819, %v1756_v34  }
  0x54   :  { %469 = vperm.xlu2 %1818, %v1758_v35  }
  0x5a   :  { %450 = vperm.xlu1 %1820, %v1757_v38  }
  0x5b   :  { %488 = vperm.xlu0 %1819, %v1759_v39  }
  0x5c   :  { %542 = vperm.xlu2 %1818, %v1761_v40   ;;  %v2016_v41 = vpop.permute.xlu2 %71 }
  0x62   :  { %515 = vperm.xlu1 %1820, %v1760_v44  }
  0x63   :  { %569 = vperm.xlu0 %1819, %v1762_v45   ;;  %v2117_v45 = vld.sshfl [vmem:[#allocation1 + $0x8] sm:$0xff pattern:$0x75316420] }
  0x64   :  { %605 = vrot.lane.b32.xlu2 %v596_v32, %s1884_s22  ;;  %v2027_v48 = vpop.permute.xlu2 %86 }
  0x6a   :  { %603 = vrot.lane.b32.xlu1 %v595_v33, %s1884_s22 }
  0x6b   :  { %607 = vrot.lane.b32.xlu0 %v597_v36, %s1884_s22 }
  0x6c   :  { %635 = vperm.xlu2 %1818, %v1764_v49  }
  0x6e   :  { %v2034_v50 = vpop.permute.xlu2 %150 }
  0x72   :  { %609 = vrot.lane.b32.xlu1 %v598_v37, %s1884_s22 }
  0x73   :  { %654 = vperm.xlu0 %1819, %v1765_v51  }
  0x74   :  { %692 = vperm.xlu2 %1818, %v1767_v52  }
  0x76   :  { %v2046_v55 = vpop.permute.xlu2 %154 }
  0x7a   :  { %673 = vperm.xlu1 %1820, %v1766_v56  }
  0x7b   :  { %718 = vrot.lane.b32.xlu0 %v710_v42, %s1885_s9 }
  0x7c   :  { %722 = vrot.lane.b32.xlu2 %v712_v46, %s1885_s9  ;;  %v44_v60 = vpop.permute.xlu1 %43  ;;  %v2119_v46 = vld.sshfl [vmem:[#allocation1] sm:$0xff pattern:$0x75316420] }
  0x7d   :  { %v40_v61 = vpop.permute.xlu0 %39  ;;  %1697 = vst [vmem:[#allocation1] ss:$2 sm:$0xff] %v1935_v2 }
  0x7e   :  { %v2058_v62 = vpop.permute.xlu2 %201 }
  0x82   :  { %720 = vrot.lane.b32.xlu1 %v711_v43, %s1885_s9 }
  0x83   :  { %724 = vrot.lane.b32.xlu0 %v713_v47, %s1885_s9 }
  0x84   :  { %769 = vperm.xlu2 %1818, %v1770_v3   ;;  %v46_v8 = vpop.permute.xlu1 %45 }
  0x85   :  { %v50_v10 = vsel %vm49_vm0, %v44_v60, %v46_v8  ;;  %v53_v11 = vsel %vm49_vm0, %v46_v8, %v40_v61  ;;  %v42_v12 = vpop.permute.xlu0 %41 }
  0x86   :  { %v64_v13 = vmul.f32 %v56_v4, %v53_v11  ;;  %v67_v14 = vmul.f32 %v59_v5, %v50_v10  ;;  %v51_v15 = vsel %vm49_vm0, %v42_v12, %v44_v60  ;;  %v52_v16 = vsel %vm49_vm0, %v40_v61, %v42_v12  ;;  %v2094_v17 = vpop.permute.xlu2 %265  ;;  %v1772_v12 = vld [vmem:[%s3084_s1 + $0x36] sm:$0x3] }
  0x87   :  { %v65_v18 = vmul.f32 %v57_v6, %v52_v16  ;;  %v66_v19 = vmul.f32 %v58_v7, %v51_v15 }
  0x88   :  { %v74_v22 = vperm.slane %v64_v13, 0  ;;  %v77_v23 = vperm.slane %v67_v14, 0  ;;  %v89_v24 = vperm.slane %v64_v13, 1  ;;  %v92_v25 = vperm.slane %v67_v14, 1 }
  0x89   :  { %v75_v27 = vperm.slane %v65_v18, 0  ;;  %v76_v28 = vperm.slane %v66_v19, 0  ;;  %v90_v29 = vperm.slane %v65_v18, 1  ;;  %v91_v30 = vperm.slane %v66_v19, 1 }
  0x8a   :  { %750 = vperm.xlu1 %1820, %v1769_v20   ;;  %v130_v31 = vperm.slane %v67_v14, 3  ;;  %v127_v32 = vperm.slane %v64_v13, 3  ;;  %v128_v33 = vperm.slane %v65_v18, 3  ;;  %v129_v34 = vperm.slane %v66_v19, 3 }
  0x8b   :  { %788 = vperm.xlu0 %1819, %v1771_v26   ;;  %v78_v35 = vmul.f32 %v74_v22, %v2016_v41  ;;  %v79_v36 = vmul.f32 %v75_v27, %v2016_v41  ;;  %v80_v37 = vmul.f32 %v76_v28, %v2016_v41  ;;  %v81_v38 = vmul.f32 %v77_v23, %v2016_v41 }
  0x8c   :  { %833 = vrot.lane.b32.xlu2 %v825_v53, %s1886_s21  ;;  %v125_v39 = vpop.permute.xlu1 %124  ;;  %v93_v40 = vmul.f32 %v89_v24, %v2027_v48  ;;  %v94_v42 = vmul.f32 %v90_v29, %v2027_v48  ;;  %v95_v43 = vmul.f32 %v91_v30, %v2027_v48  ;;  %v96_v44 = vmul.f32 %v92_v25, %v2027_v48  ;;  %v2124_v53 = vld [vmem:[%s3088_s5 + $0x1] ss:$8 sm:$0xf] }
  0x8d   :  { %v131_v47 = vmul.f32 %v127_v32, %v125_v39  ;;  %v132_v49 = vmul.f32 %v128_v33, %v125_v39  ;;  %v133_v51 = vmul.f32 %v129_v34, %v125_v39  ;;  %v134_v41 = vmul.f32 %v130_v31, %v125_v39  ;;  %v106_v52 = vpop.permute.xlu0 %105 }
  0x8e   :  { %v97_v56 = vadd.f32 %v93_v40, %v78_v35  ;;  %v98_v59 = vadd.f32 %v94_v42, %v79_v36  ;;  %v99_v60 = vadd.f32 %v95_v43, %v80_v37  ;;  %v100_v48 = vadd.f32 %v96_v44, %v81_v38  ;;  %v2127_v61 = vpop.permute.xlu2 %271  ;;  %v2156_v36 = vld.sshfl [vmem:[#allocation1 + $0x10] sm:$0xff pattern:$0x75316420] }
  0x8f   :  { %v108_v3 = vperm.slane %v64_v13, 2  ;;  %v109_v8 = vperm.slane %v65_v18, 2  ;;  %v110_v10 = vperm.slane %v66_v19, 2  ;;  %v111_v11 = vperm.slane %v67_v14, 2 }
  0x90   :  { %v277_v15 = vsel %vm273_vm1, %v2127_v61, %v2094_v17  ;;  %v166_v16 = vperm.slane %v2124_v53, 0  ;;  %v169_v18 = vperm.slane %v2124_v53, 3  ;;  %v167_v19 = vperm.slane %v2124_v53, 1 }
  0x91   :  { %v112_v20 = vmul.f32 %v108_v3, %v106_v52  ;;  %v113_v22 = vmul.f32 %v109_v8, %v106_v52  ;;  %v114_v23 = vmul.f32 %v110_v10, %v106_v52  ;;  %v115_v13 = vmul.f32 %v111_v11, %v106_v52 }
  0x92   :  { %v2140_v14 = vmul.f32 %v281_v21, %v277_v15  ;;  %807 = vperm.xlu1 %1820, %v1772_v12   ;;  %v168_v24 = vperm.slane %v2124_v53, 2 }
  0x93   :  { %v116_v25 = vadd.f32 %v112_v20, %v97_v56  ;;  %v117_v26 = vadd.f32 %v113_v22, %v98_v59  ;;  %v118_v27 = vadd.f32 %v114_v23, %v99_v60  ;;  %v119_v28 = vadd.f32 %v115_v13, %v100_v48  ;;  %835 = vrot.lane.b32.xlu0 %v2043_v54, %s1886_s21  ;;  %v2158_v54 = vld.sshfl [vmem:[#allocation1 + $0x18] sm:$0xff pattern:$0x75316420] }
  0x94   :  { %839 = vrot.lane.b32.xlu2 %v2051_v57, %s1886_s21  ;;  %v153_v29 = vpop.permute.xlu1 %152  ;;  %v338_v30 = vperm.slane %v2140_v14, 2  ;;  %1699 = vst [vmem:[#allocation1 + $0x10] ss:$2 sm:$0xff] %v1930_v1  ;;  %v1776_v59 = vld [vmem:[%s3084_s1 + $0x3c] sm:$0x3] }
  0x95   :  { %v157_v31 = vpop.permute.xlu0 %156  ;;  %v160_v32 = vsel %vm158_vm2, %v153_v29, %v2046_v55  ;;  %v161_v33 = vsel %vm158_vm2, %v2034_v50, %v153_v29  ;;  %v135_v34 = vadd.f32 %v131_v47, %v116_v25  ;;  %v136_v35 = vadd.f32 %v132_v49, %v117_v26  ;;  %v1774_v49 = vld [vmem:[%s3084_s1 + $0x38] sm:$0x3] }
  0x96   :  { %v159_v57 = vsel %vm158_vm2, %v2046_v55, %v157_v31  ;;  %v162_v37 = vsel %vm158_vm2, %v157_v31, %v2034_v50  ;;  %v2168_v38 = vmul.f32 %v167_v19, %v161_v33  ;;  %v2172_v39 = vmul.f32 %v168_v24, %v160_v32  ;;  %v2174_v40 = vpop.permute.xlu2 %335 }
  0x97   :  { %v174_v42 = vmul.f32 %v166_v16, %v162_v37  ;;  %v2181_v55 = vmul.f32 %v169_v18, %v159_v57  ;;  %v2184_v50 = vmul.f32 %v338_v30, %v2174_v40  ;;  %v137_v43 = vadd.f32 %v133_v51, %v118_v27 }
  0x98   :  { %v205_v44 = vperm.slane %v2168_v38, 1  ;;  %v206_v47 = vperm.slane %v2172_v39, 1  ;;  %v138_v51 = vadd.f32 %v134_v41, %v119_v28  ;;  %v186_v3 = vperm.slane %v2168_v38, 0 }
  0x99   :  { %v204_v52 = vperm.slane %v174_v42, 1  ;;  %v207_v56 = vperm.slane %v2181_v55, 1  ;;  %v226_v60 = vperm.slane %v2181_v55, 2  ;;  %v185_v48 = vperm.slane %v174_v42, 0 }
  0x9a   :  { %837 = vrot.lane.b32.xlu1 %v2053_v58, %s1886_s21  ;;  %v187_v8 = vperm.slane %v2172_v39, 0  ;;  %v188_v10 = vperm.slane %v2181_v55, 0  ;;  %v209_v12 = vmul.f32 %v205_v44, %v2058_v62  ;;  %v210_v15 = vmul.f32 %v206_v47, %v2058_v62 }
  0x9b   :  { %865 = vperm.xlu0 %1819, %v1774_v49   ;;  %v208_v11 = vmul.f32 %v204_v52, %v2058_v62  ;;  %v223_v20 = vperm.slane %v174_v42, 2  ;;  %v224_v22 = vperm.slane %v2168_v38, 2  ;;  %v225_v58 = vperm.slane %v2172_v39, 2  ;;  %v1775_v49 = vld [vmem:[%s3084_s1 + $0x3a] sm:$0x3] }
  0x9c   :  { %903 = vperm.xlu2 %1818, %v1776_v59   ;;  %v183_v41 = vpop.permute.xlu1 %182  ;;  %v211_v23 = vmul.f32 %v207_v56, %v2058_v62  ;;  %v1777_v62 = vld [vmem:[%s3084_s1 + $0x3e] sm:$0x3] }
  0x9d   :  { %v221_v13 = vpop.permute.xlu0 %220  ;;  %v189_v25 = vmul.f32 %v185_v48, %v183_v41  ;;  %v190_v26 = vmul.f32 %v186_v3, %v183_v41  ;;  %v191_v27 = vmul.f32 %v187_v8, %v183_v41  ;;  %v192_v28 = vmul.f32 %v188_v10, %v183_v41 }
  0x9e   :  { %v227_v29 = vmul.f32 %v223_v20, %v221_v13  ;;  %v228_v30 = vmul.f32 %v224_v22, %v221_v13  ;;  %v229_v31 = vmul.f32 %v225_v58, %v221_v13  ;;  %v230_v32 = vmul.f32 %v226_v60, %v221_v13  ;;  %v2207_v47 = vpop.permute.xlu2 %382 }
  0x9f   :  { %v193_v33 = vadd.f32 %v189_v25, %v135_v34  ;;  %v194_v57 = vadd.f32 %v190_v26, %v136_v35  ;;  %v195_v37 = vadd.f32 %v191_v27, %v137_v43  ;;  %v196_v44 = vadd.f32 %v192_v28, %v138_v51  ;;  %v1779_v25 = vld [vmem:[%s3084_s1 + $0x40] sm:$0x3] }
  0xa0   :  { %v242_v60 = vperm.slane %v174_v42, 3  ;;  %v243_v34 = vperm.slane %v2168_v38, 3  ;;  %v244_v35 = vperm.slane %v2172_v39, 3  ;;  %v245_v43 = vperm.slane %v2181_v55, 3 }
  0xa1   :  { %v212_v52 = vadd.f32 %v208_v11, %v193_v33  ;;  %v213_v56 = vadd.f32 %v209_v12, %v194_v57  ;;  %v214_v59 = vadd.f32 %v210_v15, %v195_v37  ;;  %v215_v48 = vadd.f32 %v211_v23, %v196_v44 }
  0xa2   :  { %884 = vperm.xlu1 %1820, %v1775_v49   ;;  %v282_v12 = vperm.slane %v2080_v9, 1  ;;  %v283_v26 = vperm.slane %v2080_v9, 2  ;;  %v300_v28 = vperm.slane %v2140_v14, 0 }
  0xa3   :  { %922 = vperm.xlu0 %1819, %v1777_v62   ;;  %v231_v51 = vadd.f32 %v227_v29, %v212_v52  ;;  %v232_v3 = vadd.f32 %v228_v30, %v213_v56  ;;  %v233_v8 = vadd.f32 %v229_v31, %v214_v59  ;;  %v234_v10 = vadd.f32 %v230_v32, %v215_v48 }
  0xa4   :  { %950 = vrot.lane.b32.xlu2 %v2117_v45, %s1887_s14  ;;  %v240_v11 = vpop.permute.xlu1 %239 }
  0xa5   :  { %v246_v15 = vmul.f32 %v242_v60, %v240_v11  ;;  %v247_v42 = vmul.f32 %v243_v34, %v240_v11  ;;  %v248_v20 = vmul.f32 %v244_v35, %v240_v11  ;;  %v249_v38 = vmul.f32 %v245_v43, %v240_v11  ;;  %v268_v22 = vpop.permute.xlu0 %267  ;;  %v1782_v60 = vld [vmem:[%s3084_s1 + $0x46] sm:$0x3] }
  0xa6   :  { %v276_v39 = vsel %vm273_vm1, %v2094_v17, %v268_v22  ;;  %v2226_v45 = vpop.permute.xlu2 %412  ;;  %v284_v17 = vperm.slane %v2080_v9, 3  ;;  %v319_v34 = vperm.slane %v2140_v14, 1  ;;  %v357_v35 = vperm.slane %v2140_v14, 3 }
  0xa7   :  { %v250_v55 = vadd.f32 %v246_v15, %v231_v51  ;;  %v251_v58 = vadd.f32 %v247_v42, %v232_v3  ;;  %v252_v41 = vadd.f32 %v248_v20, %v233_v8  ;;  %v253_v23 = vadd.f32 %v249_v38, %v234_v10 }
  0xa8   :  { %v290_v13 = vmul.f32 %v282_v12, %v276_v39 }
  0xaa   :  { %v339_v27 = vperm.slane %v290_v13, 2  ;;  %948 = vrot.lane.b32.xlu1 %v2119_v46, %s1887_s14  ;;  %v301_v29 = vperm.slane %v290_v13, 0  ;;  %v320_v3 = vperm.slane %v290_v13, 1  ;;  %v358_v20 = vperm.slane %v290_v13, 3  ;;  %v1052_v13 = vld [vmem:[%s3085_s2] sm:$0x3] }
  0xab   :  { %952 = vrot.lane.b32.xlu0 %v2156_v36, %s1887_s14 }
  0xac   :  { %980 = vperm.xlu2 %1818, %v1779_v25   ;;  %v270_v30 = vpop.permute.xlu1 %269  ;;  %v343_v31 = vmul.f32 %v339_v27, %v2174_v40 }
  0xad   :  { %v274_v32 = vsel %vm273_vm1, %v270_v30, %v2127_v61  ;;  %v275_v33 = vsel %vm273_vm1, %v268_v22, %v270_v30  ;;  %v298_v46 = vpop.permute.xlu0 %297  ;;  %v1780_v61 = vld [vmem:[%s3084_s1 + $0x42] sm:$0x3] }
  0xae   :  { %v291_v57 = vmul.f32 %v283_v26, %v275_v33  ;;  %v292_v37 = vmul.f32 %v284_v17, %v274_v32  ;;  %v304_v44 = vmul.f32 %v300_v28, %v298_v46  ;;  %v305_v36 = vmul.f32 %v301_v29, %v298_v46  ;;  %v2259_v10 = vpop.permute.xlu2 %469 }
  0xb0   :  { %v340_v49 = vperm.slane %v291_v57, 2  ;;  %v341_v62 = vperm.slane %v292_v37, 2  ;;  %v302_v52 = vperm.slane %v291_v57, 0  ;;  %v303_v56 = vperm.slane %v292_v37, 0 }
  0xb1   :  { %v308_v59 = vadd.f32 %v304_v44, %v250_v55  ;;  %v309_v48 = vadd.f32 %v305_v36, %v251_v58  ;;  %v321_v11 = vperm.slane %v291_v57, 1  ;;  %v322_v15 = vperm.slane %v292_v37, 1 }
  0xb2   :  { %v306_v43 = vmul.f32 %v302_v52, %v298_v46  ;;  %v307_v51 = vmul.f32 %v303_v56, %v298_v46  ;;  %954 = vrot.lane.b32.xlu1 %v2158_v54, %s1887_s14  ;;  %v344_v8 = vmul.f32 %v340_v49, %v2174_v40  ;;  %v345_v42 = vmul.f32 %v341_v62, %v2174_v40  ;;  %v1158_v52 = vld [vmem:[%s3086_s3] sm:$0xf] }
  0xb3   :  { %999 = vperm.xlu0 %1819, %v1780_v61   ;;  %v359_v39 = vperm.slane %v291_v57, 3  ;;  %v360_v55 = vperm.slane %v292_v37, 3 }
  0xb4   :  { %v310_v38 = vadd.f32 %v306_v43, %v252_v41  ;;  %v311_v22 = vadd.f32 %v307_v51, %v253_v23  ;;  %1037 = vperm.xlu2 %1818, %v1782_v60   ;;  %v317_v14 = vpop.permute.xlu1 %316  ;;  %v1781_v41 = vld [vmem:[%s3084_s1 + $0x44] sm:$0x3]  ;;  %v2268_v23 = vld [vmem:[%s3088_s5 + $0x3] ss:$8 sm:$0xf] }
  0xb5   :  { %v323_v58 = vmul.f32 %v319_v34, %v317_v14  ;;  %v324_v25 = vmul.f32 %v320_v3, %v317_v14  ;;  %v325_v54 = vmul.f32 %v321_v11, %v317_v14  ;;  %v326_v27 = vmul.f32 %v322_v15, %v317_v14  ;;  %v355_v28 = vpop.permute.xlu0 %354  ;;  %v1787_v3 = vld [vmem:[%s3086_s3 + $0x4] sm:$0xf] }
  0xb6   :  { %v361_v29 = vmul.f32 %v357_v35, %v355_v28  ;;  %v362_v30 = vmul.f32 %v358_v20, %v355_v28  ;;  %v363_v32 = vmul.f32 %v359_v39, %v355_v28  ;;  %v364_v33 = vmul.f32 %v360_v55, %v355_v28 }
  0xb7   :  { %v327_v46 = vadd.f32 %v323_v58, %v308_v59  ;;  %v328_v44 = vadd.f32 %v324_v25, %v309_v48  ;;  %v329_v36 = vadd.f32 %v325_v54, %v310_v38  ;;  %v330_v40 = vadd.f32 %v326_v27, %v311_v22  ;;  %v1789_v27 = vld [vmem:[%s3086_s3 + $0xc] sm:$0xf] }
  0xb8   :  { %v3092_v56 = vperm.slane %v2268_v23, 1  ;;  %v3091_v15 = vperm.slane %v2268_v23, 3 }
  0xb9   :  { %v346_v57 = vadd.f32 %v2184_v50, %v327_v46  ;;  %v347_v37 = vadd.f32 %v343_v31, %v328_v44  ;;  %v348_v49 = vadd.f32 %v344_v8, %v329_v36  ;;  %v349_v62 = vadd.f32 %v345_v42, %v330_v40  ;;  %v2283_v31 = vpop.permute.xlu2 %542  ;;  %v1788_v8 = vld [vmem:[%s3086_s3 + $0x8] sm:$0xf] }
  0xba   :  { %1018 = vperm.xlu1 %1820, %v1781_v41   ;;  %v3090_v41 = vperm.slane %v2268_v23, 0 }
  0xbb   :  { %v2279_v61 = vadd.f32 %v361_v29, %v346_v57  ;;  %v366_v59 = vadd.f32 %v362_v30, %v347_v37  ;;  %v2281_v48 = vadd.f32 %v363_v32, %v348_v49  ;;  %v368_v60 = vadd.f32 %v364_v33, %v349_v62  ;;  %1055 = vperm.xlu0 %1819, %v1052_v13   ;;  %v1790_v30 = vld [vmem:[%s3086_s3 + $0x10] sm:$0xf] }
  0xbc   :  { %1161 = vperm.xlu2 %1818, %v1158_v52   ;;  %v381_v50 = vpop.permute.xlu1 %380 }
  0xbd   :  { %v385_v34 = vpop.permute.xlu0 %384  ;;  %v391_v35 = vsel %vm3109_vm3, %v381_v50, %v2207_v47 }
  0xbe   :  { %v405_v43 = vmul.f32 %v3092_v56, %v391_v35  ;;  %v572_v56 = vperm.slane %v1935_v2, 3 }
  0xc0   :  { %v416_v51 = vperm.slane %v405_v43, 0  ;;  %v435_v20 = vperm.slane %v405_v43, 1  ;;  %v473_v32 = vperm.slane %v405_v43, 3  ;;  %v454_v44 = vperm.slane %v405_v43, 2 }
  0xc1   :  { %v2302_v58 = vpop.permute.xlu2 %605 }
  0xc2   :  { %v420_v11 = vmul.f32 %v416_v51, %v2226_v45  ;;  %v477_v35 = vmul.f32 %v473_v32, %v2259_v10 }
  0xc3   :  { %1176 = vperm.xlu0 %1819, %v1787_v3   ;;  %v1791_v3 = vld [vmem:[%s3086_s3 + $0x14] sm:$0xf] }
  0xc4   :  { %1211 = vperm.xlu2 %1818, %v1788_v8   ;;  %v424_v42 = vadd.f32 %v420_v11, %v366_v59  ;;  %v387_v38 = vpop.permute.xlu1 %386 }
  0xc5   :  { %v432_v22 = vpop.permute.xlu0 %431  ;;  %v389_v14 = vsel %vm3109_vm3, %v385_v34, %v387_v38  ;;  %v392_v37 = vsel %vm3109_vm3, %v387_v38, %v381_v50  ;;  %v3093_v50 = vperm.slane %v2268_v23, 2 }
  0xc6   :  { %v439_v39 = vmul.f32 %v435_v20, %v432_v22  ;;  %v407_v55 = vmul.f32 %v3091_v15, %v389_v14  ;;  %v404_v43 = vmul.f32 %v3090_v41, %v392_v37  ;;  %v519_v41 = vperm.slane %v1935_v2, 5 }
  0xc8   :  { %v443_v25 = vadd.f32 %v439_v39, %v424_v42  ;;  %v418_v54 = vperm.slane %v407_v55, 0  ;;  %v437_v28 = vperm.slane %v407_v55, 1  ;;  %v475_v29 = vperm.slane %v407_v55, 3 }
  0xc9   :  { %v456_v36 = vperm.slane %v407_v55, 2  ;;  %v390_v42 = vsel %vm3109_vm3, %v2207_v47, %v385_v34  ;;  %v415_v38 = vperm.slane %v404_v43, 0 }
  0xca   :  { %v422_v33 = vmul.f32 %v418_v54, %v2226_v45  ;;  %v441_v46 = vmul.f32 %v437_v28, %v432_v22  ;;  %v479_v40 = vmul.f32 %v475_v29, %v2259_v10  ;;  %v406_v55 = vmul.f32 %v3093_v50, %v390_v42 }
  0xcb   :  { %1230 = vperm.xlu0 %1819, %v1789_v27   ;;  %v434_v27 = vperm.slane %v404_v43, 1  ;;  %v492_v42 = vperm.slane %v1935_v2, 4 }
  0xcc   :  { %1265 = vperm.xlu2 %1818, %v1790_v30   ;;  %v426_v13 = vadd.f32 %v422_v33, %v368_v60  ;;  %v451_v57 = vpop.permute.xlu1 %450  ;;  %v2323_v60 = vpop.permute.xlu2 %635  ;;  %v417_v54 = vperm.slane %v406_v55, 0  ;;  %v436_v32 = vperm.slane %v406_v55, 1 }
  0xcd   :  { %v2315_v49 = vpop.permute.xlu0 %488  ;;  %v458_v62 = vmul.f32 %v454_v44, %v451_v57  ;;  %v460_v52 = vmul.f32 %v456_v36, %v451_v57  ;;  %v438_v33 = vmul.f32 %v434_v27, %v432_v22  ;;  %v545_v44 = vperm.slane %v1935_v2, 2 }
  0xce   :  { %v445_v59 = vadd.f32 %v441_v46, %v426_v13  ;;  %v421_v30 = vmul.f32 %v417_v54, %v2226_v45  ;;  %v453_v46 = vperm.slane %v404_v43, 2  ;;  %v546_v36 = vperm.slane %v1935_v2, 6 }
  0xcf   :  { %v462_v51 = vadd.f32 %v458_v62, %v443_v25  ;;  %v419_v25 = vmul.f32 %v415_v38, %v2226_v45  ;;  %v491_v13 = vperm.slane %v1935_v2, 0  ;;  %v440_v45 = vmul.f32 %v436_v32, %v432_v22 }
  0xd0   :  { %v464_v8 = vadd.f32 %v460_v52, %v445_v59  ;;  %v457_v62 = vmul.f32 %v453_v46, %v451_v57  ;;  %v494_v52 = vperm.slane %v1930_v1, 4  ;;  %v425_v59 = vadd.f32 %v421_v30, %v2281_v48 }
  0xd1   :  { %v2325_v11 = vadd.f32 %v477_v35, %v462_v51  ;;  %v423_v29 = vadd.f32 %v419_v25, %v2279_v61  ;;  %v548_v61 = vperm.slane %v1930_v1, 6  ;;  %v472_v35 = vperm.slane %v404_v43, 3 }
  0xd2   :  { %v2331_v20 = vadd.f32 %v479_v40, %v464_v8  ;;  %v547_v40 = vperm.slane %v1930_v1, 2  ;;  %v455_v51 = vperm.slane %v406_v55, 2  ;;  %v554_v8 = vperm.slane %v546_v36, 2 }
  0xd3   :  { %1284 = vperm.xlu0 %1819, %v1791_v3   ;;  %v442_v37 = vadd.f32 %v438_v33, %v423_v29  ;;  %v553_v3 = vperm.slane %v545_v44, 2  ;;  %v493_v38 = vperm.slane %v1930_v1, 0  ;;  %v499_v54 = vperm.slane %v491_v13, 0 }
  0xd4   :  { %v2333_v14 = vpop.permute.xlu1 %515  ;;  %v2340_v28 = vpop.permute.xlu2 %692  ;;  %v2357_v25 = vperm.slane %v547_v40, 2  ;;  %v459_v27 = vmul.f32 %v455_v51, %v451_v57  ;;  %v518_v46 = vperm.slane %v1935_v2, 1  ;;  %v520_v48 = vperm.slane %v1930_v1, 1 }
  0xd5   :  { %v2335_v39 = vpop.permute.xlu0 %569  ;;  %v461_v29 = vadd.f32 %v457_v62, %v442_v37  ;;  %v521_v22 = vperm.slane %v1930_v1, 5  ;;  %v474_v32 = vperm.slane %v406_v55, 3  ;;  %v444_v44 = vadd.f32 %v440_v45, %v425_v59  ;;  %v2371_v62 = vld [vmem:[%s3088_s5 + $0x5] ss:$8 sm:$0xf] }
  0xd6   :  { %v502_v36 = vperm.slane %v494_v52, 0  ;;  %v476_v40 = vmul.f32 %v472_v35, %v2259_v10  ;;  %v556_v57 = vperm.slane %v548_v61, 2  ;;  %v500_v13 = vperm.slane %v492_v42, 0 }
  0xd7   :  { %v501_v37 = vperm.slane %v493_v38, 0  ;;  %v463_v51 = vadd.f32 %v459_v27, %v444_v44  ;;  %v526_v50 = vperm.slane %v518_v46, 1  ;;  %v527_v55 = vperm.slane %v519_v41, 1 }
  0xd8   :  { %v480_v15 = vadd.f32 %v476_v40, %v461_v29  ;;  %v528_v59 = vperm.slane %v520_v48, 1  ;;  %v529_v52 = vperm.slane %v521_v22, 1  ;;  %v503_v45 = vmul.f32 %v499_v54, %v2315_v49 }
  0xd9   :  { %v506_v61 = vmul.f32 %v502_v36, %v2315_v49  ;;  %v478_v35 = vmul.f32 %v474_v32, %v2259_v10  ;;  %v3097_v42 = vperm.slane %v2371_v62, 1  ;;  %v504_v38 = vmul.f32 %v500_v13, %v2315_v49 }
  0xda   :  { %v3094_v27 = vperm.slane %v2371_v62, 0  ;;  %v3096_v29 = vperm.slane %v2371_v62, 2  ;;  %v3095_v44 = vperm.slane %v2371_v62, 3  ;;  %v505_v41 = vmul.f32 %v501_v37, %v2315_v49 }
  0xdb   :  { %v482_v46 = vadd.f32 %v478_v35, %v463_v51  ;;  %v507_v48 = vadd.f32 %v503_v45, %v480_v15  ;;  %v510_v54 = vadd.f32 %v506_v61, %v2331_v20  ;;  %v530_v10 = vmul.f32 %v526_v50, %v2333_v14 }
  0xdc   :  { %v2343_v47 = vpop.permute.xlu1 %603  ;;  %v2363_v43 = vpop.permute.xlu2 %722  ;;  %v531_v32 = vmul.f32 %v527_v55, %v2333_v14  ;;  %v532_v36 = vmul.f32 %v528_v59, %v2333_v14  ;;  %v533_v49 = vmul.f32 %v529_v52, %v2333_v14  ;;  %v557_v37 = vmul.f32 %v553_v3, %v2283_v31 }
  0xdd   :  { %v2345_v34 = vpop.permute.xlu0 %607  ;;  %v614_v40 = vsel %vm3108_vm4, %v2343_v47, %v2302_v58  ;;  %v573_v51 = vperm.slane %v1935_v2, 7  ;;  %v574_v55 = vperm.slane %v1930_v1, 3  ;;  %v575_v14 = vperm.slane %v1930_v1, 7 }
  0xde   :  { %v613_v15 = vsel %vm3108_vm4, %v2302_v58, %v2345_v34  ;;  %v558_v58 = vmul.f32 %v554_v8, %v2283_v31  ;;  %v508_v52 = vadd.f32 %v504_v38, %v2325_v11  ;;  %v509_v45 = vadd.f32 %v505_v41, %v482_v46  ;;  %v2434_v11 = vld [vmem:[%s3088_s5 + $0x7] ss:$8 sm:$0xf] }
  0xdf   :  { %v2421_v3 = vmul.f32 %v3097_v42, %v613_v15  ;;  %v559_v8 = vmul.f32 %v2357_v25, %v2283_v31  ;;  %v537_v35 = vadd.f32 %v533_v49, %v510_v54  ;;  %v560_v38 = vmul.f32 %v556_v57, %v2283_v31 }
  0xe0   :  { %v536_v61 = vadd.f32 %v532_v36, %v509_v45  ;;  %v580_v41 = vperm.slane %v572_v56, 3  ;;  %v581_v46 = vperm.slane %v573_v51, 3 }
  0xe1   :  { %v639_v54 = vperm.slane %v2421_v3, 0 }
  0xe2   :  { %v563_v49 = vadd.f32 %v559_v8, %v536_v61 }
  0xe4   :  { %v610_v33 = vpop.permute.xlu1 %609  ;;  %v2411_v59 = vpop.permute.xlu2 %769 }
  0xe5   :  { %v2365_v30 = vpop.permute.xlu0 %654  ;;  %v612_v50 = vsel %vm3108_vm4, %v2345_v34, %v610_v33  ;;  %v615_v20 = vsel %vm3108_vm4, %v610_v33, %v2343_v47  ;;  %v2417_v34 = vmul.f32 %v3094_v27, %v614_v40  ;;  %v534_v47 = vadd.f32 %v530_v10, %v507_v48  ;;  %v2442_v10 = vld [vmem:[%s3088_s5 + $0x6] ss:$8 sm:$0xf] }
  0xe6   :  { %v2425_v2 = vmul.f32 %v3096_v29, %v612_v50  ;;  %v2429_v1 = vmul.f32 %v3095_v44, %v615_v20  ;;  %v535_v33 = vadd.f32 %v531_v32, %v508_v52  ;;  %v582_v48 = vperm.slane %v574_v55, 3 }
  0xe7   :  { %v583_v40 = vperm.slane %v575_v14, 3  ;;  %v638_v15 = vperm.slane %v2417_v34, 0  ;;  %v3098_v50 = vperm.slane %v2434_v11, 3  ;;  %v561_v32 = vadd.f32 %v557_v37, %v534_v47 }
  0xe8   :  { %v640_v56 = vperm.slane %v2425_v2, 0  ;;  %v641_v31 = vperm.slane %v2429_v1, 0  ;;  %v562_v36 = vadd.f32 %v558_v58, %v535_v33  ;;  %v564_v20 = vadd.f32 %v560_v38, %v537_v35 }
  0xe9   :  { %v734_v51 = vperm.slane %v2442_v10, 0  ;;  %v584_v55 = vmul.f32 %v580_v41, %v2335_v39  ;;  %v585_v14 = vmul.f32 %v581_v46, %v2335_v39  ;;  %v586_v52 = vmul.f32 %v582_v48, %v2335_v39 }
  0xea   :  { %v735_v37 = vperm.slane %v2442_v10, 1  ;;  %v587_v45 = vmul.f32 %v583_v40, %v2335_v39  ;;  %v642_v47 = vmul.f32 %v638_v15, %v2323_v60  ;;  %v736_v27 = vperm.slane %v2442_v10, 2 }
  0xeb   :  { %v737_v58 = vperm.slane %v2442_v10, 3  ;;  %v588_v8 = vadd.f32 %v584_v55, %v561_v32  ;;  %v643_v33 = vmul.f32 %v639_v54, %v2323_v60  ;;  %v644_v61 = vmul.f32 %v640_v56, %v2323_v60 }
  0xec   :  { %v2385_v22 = vpop.permute.xlu1 %673  ;;  %v645_v35 = vmul.f32 %v641_v31, %v2323_v60  ;;  %v2462_v38 = vpop.permute.xlu2 %833  ;;  %v590_v41 = vadd.f32 %v586_v52, %v563_v49  ;;  %v591_v46 = vadd.f32 %v587_v45, %v564_v20  ;;  %v589_v48 = vadd.f32 %v585_v14, %v562_v36 }
  0xed   :  { %v2394_v13 = vpop.permute.xlu0 %718  ;;  %v658_v39 = vperm.slane %v2421_v3, 1  ;;  %v695_v40 = vperm.slane %v2417_v34, 3  ;;  %v657_v15 = vperm.slane %v2417_v34, 1  ;;  %v659_v32 = vperm.slane %v2425_v2, 1 }
  0xee   :  { %v660_v54 = vperm.slane %v2429_v1, 1  ;;  %v696_v56 = vperm.slane %v2421_v3, 3  ;;  %v646_v60 = vadd.f32 %v642_v47, %v588_v8  ;;  %v676_v31 = vperm.slane %v2417_v34, 2 }
  0xef   :  { %v677_v49 = vperm.slane %v2421_v3, 2  ;;  %v647_v20 = vadd.f32 %v643_v33, %v589_v48  ;;  %v661_v55 = vmul.f32 %v657_v15, %v2365_v30  ;;  %v648_v14 = vadd.f32 %v644_v61, %v590_v41 }
  0xf0   :  { %v649_v52 = vadd.f32 %v645_v35, %v591_v46  ;;  %v662_v44 = vmul.f32 %v658_v39, %v2365_v30  ;;  %v678_v29 = vperm.slane %v2425_v2, 2  ;;  %v679_v42 = vperm.slane %v2429_v1, 2 }
  0xf1   :  { %v697_v3 = vperm.slane %v2425_v2, 3  ;;  %v663_v47 = vmul.f32 %v659_v32, %v2365_v30  ;;  %v664_v8 = vmul.f32 %v660_v54, %v2365_v30  ;;  %v680_v61 = vmul.f32 %v676_v31, %v2385_v22 }
  0xf2   :  { %v681_v35 = vmul.f32 %v677_v49, %v2385_v22  ;;  %v682_v41 = vmul.f32 %v678_v29, %v2385_v22  ;;  %v683_v46 = vmul.f32 %v679_v42, %v2385_v22  ;;  %v665_v15 = vadd.f32 %v661_v55, %v646_v60 }
  0xf3   :  { %v667_v48 = vadd.f32 %v663_v47, %v648_v14  ;;  %v668_v39 = vadd.f32 %v664_v8, %v649_v52  ;;  %v698_v32 = vperm.slane %v2429_v1, 3  ;;  %v699_v22 = vmul.f32 %v695_v40, %v2340_v28 }
  0xf4   :  { %v721_v25 = vpop.permute.xlu1 %720  ;;  %v840_v29 = vpop.permute.xlu2 %839  ;;  %v700_v31 = vmul.f32 %v696_v56, %v2340_v28  ;;  %v3101_v49 = vperm.slane %v2434_v11, 0  ;;  %v701_v1 = vmul.f32 %v697_v3, %v2340_v28 }
  0xf5   :  { %v725_v57 = vpop.permute.xlu0 %724  ;;  %v728_v34 = vsel %vm3107_vm5, %v721_v25, %v2363_v43  ;;  %v729_v33 = vsel %vm3107_vm5, %v2394_v13, %v721_v25  ;;  %v666_v25 = vadd.f32 %v662_v44, %v647_v20  ;;  %v686_v55 = vadd.f32 %v682_v41, %v667_v48 }
  0xf6   :  { %v2496_v2 = vmul.f32 %v735_v37, %v728_v34  ;;  %v727_v30 = vsel %vm3107_vm5, %v2363_v43, %v725_v57  ;;  %v2504_v54 = vmul.f32 %v734_v51, %v729_v33  ;;  %v730_v42 = vsel %vm3107_vm5, %v725_v57, %v2394_v13 }
  0xf7   :  { %v684_v43 = vadd.f32 %v680_v61, %v665_v15  ;;  %v685_v60 = vadd.f32 %v681_v35, %v666_v25  ;;  %v2514_v44 = vmul.f32 %v736_v27, %v727_v30  ;;  %v687_v14 = vadd.f32 %v683_v46, %v668_v39 }
  0xf8   :  { %v845_v13 = vsel %vm3106_vm6, %v840_v29, %v2462_v38  ;;  %v754_v57 = vperm.slane %v2496_v2, 0  ;;  %v2525_v56 = vmul.f32 %v737_v58, %v730_v42  ;;  %v702_v52 = vmul.f32 %v698_v32, %v2340_v28 }
  0xf9   :  { %v753_v34 = vperm.slane %v2504_v54, 0  ;;  %v755_v3 = vperm.slane %v2514_v44, 0  ;;  %v772_v47 = vperm.slane %v2504_v54, 1  ;;  %v773_v8 = vperm.slane %v2496_v2, 1 }
  0xfa   :  { %v3099_v61 = vperm.slane %v2434_v11, 1  ;;  %v2536_v35 = vmul.f32 %v3098_v50, %v845_v13  ;;  %v703_v41 = vadd.f32 %v699_v22, %v684_v43  ;;  %v3100_v28 = vperm.slane %v2434_v11, 2 }
  0xfb   :  { %v774_v48 = vperm.slane %v2514_v44, 1  ;;  %v704_v39 = vadd.f32 %v700_v31, %v685_v60  ;;  %v705_v30 = vadd.f32 %v701_v1, %v686_v55  ;;  %v706_v15 = vadd.f32 %v702_v52, %v687_v14 }
  0xfc   :  { %v2473_v36 = vpop.permute.xlu1 %750  ;;  %v775_v25 = vperm.slane %v2525_v56, 1  ;;  %v756_v32 = vperm.slane %v2525_v56, 0  ;;  %v776_v22 = vmul.f32 %v772_v47, %v2411_v59  ;;  %v777_v43 = vmul.f32 %v773_v8, %v2411_v59  ;;  %v2553_v14 = vpop.permute.xlu2 %903 }
  0xfd   :  { %v2476_v45 = vpop.permute.xlu0 %788  ;;  %v758_v33 = vmul.f32 %v754_v57, %v2473_v36  ;;  %v757_v46 = vmul.f32 %v753_v34, %v2473_v36  ;;  %v759_v42 = vmul.f32 %v755_v3, %v2473_v36  ;;  %v871_v57 = vperm.slane %v2536_v35, 0 }
  0xfe   :  { %v890_v34 = vperm.slane %v2536_v35, 1  ;;  %v760_v50 = vmul.f32 %v756_v32, %v2473_v36  ;;  %v791_v60 = vperm.slane %v2504_v54, 2  ;;  %v778_v52 = vmul.f32 %v774_v48, %v2411_v59 }
  0xff   :  { %v762_v13 = vadd.f32 %v758_v33, %v704_v39  ;;  %v761_v31 = vadd.f32 %v757_v46, %v703_v41  ;;  %v792_v3 = vperm.slane %v2496_v2, 2  ;;  %v763_v33 = vadd.f32 %v759_v42, %v705_v30 }
 0x100   :  { %v779_v41 = vmul.f32 %v775_v25, %v2411_v59  ;;  %v793_v39 = vperm.slane %v2514_v44, 2  ;;  %v764_v30 = vadd.f32 %v760_v50, %v706_v15  ;;  %v794_v59 = vperm.slane %v2525_v56, 2 }
 0x101   :  { %v781_v48 = vadd.f32 %v777_v43, %v762_v13  ;;  %v780_v32 = vadd.f32 %v776_v22, %v761_v31  ;;  %v796_v42 = vmul.f32 %v792_v3, %v2476_v45  ;;  %v813_v22 = vperm.slane %v2525_v56, 3 }
 0x102   :  { %v783_v3 = vadd.f32 %v779_v41, %v764_v30  ;;  %v798_v56 = vmul.f32 %v794_v59, %v2476_v45 }
 0x103   :  { %v800_v15 = vadd.f32 %v796_v42, %v781_v48 }
 0x104   :  { %v2517_v20 = vpop.permute.xlu1 %807  ;;  %v951_v30 = vpop.permute.xlu2 %950 }
 0x105   :  { %v836_v40 = vpop.permute.xlu0 %835 }
 0x106   :  { %v844_v1 = vsel %vm3106_vm6, %v2462_v38, %v836_v40 }
 0x10c   :  { %v838_v55 = vpop.permute.xlu1 %837 }
 0x10d   :  { %v842_v47 = vsel %vm3106_vm6, %v838_v55, %v840_v29  ;;  %v843_v36 = vsel %vm3106_vm6, %v836_v40, %v838_v55  ;;  %v866_v8 = vpop.permute.xlu0 %865  ;;  %v811_v29 = vperm.slane %v2496_v2, 3  ;;  %v2574_v40 = vmul.f32 %v3101_v49, %v844_v1 }
 0x10e   :  { %v2564_v38 = vmul.f32 %v3099_v61, %v843_v36  ;;  %v2568_v46 = vmul.f32 %v3100_v28, %v842_v47  ;;  %v810_v55 = vperm.slane %v2504_v54, 3  ;;  %v782_v47 = vadd.f32 %v778_v52, %v763_v33 }
 0x10f   :  { %v815_v13 = vmul.f32 %v811_v29, %v2517_v20  ;;  %v868_v43 = vperm.slane %v2574_v40, 0  ;;  %v795_v2 = vmul.f32 %v791_v60, %v2476_v45  ;;  %v812_v1 = vperm.slane %v2514_v44, 3 }
 0x110   :  { %v869_v25 = vperm.slane %v2564_v38, 0  ;;  %v870_v50 = vperm.slane %v2568_v46, 0  ;;  %v814_v31 = vmul.f32 %v810_v55, %v2517_v20  ;;  %v797_v54 = vmul.f32 %v793_v39, %v2476_v45 }
 0x111   :  { %v799_v61 = vadd.f32 %v795_v2, %v780_v32  ;;  %v816_v29 = vmul.f32 %v812_v1, %v2517_v20  ;;  %v819_v52 = vadd.f32 %v815_v13, %v800_v15  ;;  %v872_v33 = vmul.f32 %v868_v43, %v866_v8  ;;  %v2598_v13 = vld [vmem:[%s3088_s5 + $0x20] ss:$8 sm:$0xf]  ;;  %s1732_s5 = sshll.u32 %s3089_s6, 4  ;;  %s1733_s5 = int_to_ptr.hbm [resolvable:$true] %s1732_s5 }
 0x112   :  { %v873_v36 = vmul.f32 %v869_v25, %v866_v8  ;;  %v887_v60 = vperm.slane %v2574_v40, 1  ;;  %v888_v44 = vperm.slane %v2564_v38, 1  ;;  %v801_v48 = vadd.f32 %v797_v54, %v782_v47 }
 0x113   :  { %v817_v25 = vmul.f32 %v813_v22, %v2517_v20  ;;  %v874_v41 = vmul.f32 %v870_v50, %v866_v8  ;;  %v818_v39 = vadd.f32 %v814_v31, %v799_v61  ;;  %v802_v43 = vadd.f32 %v798_v56, %v783_v3 }
 0x114   :  { %v885_v28 = vpop.permute.xlu1 %884  ;;  %v877_v32 = vadd.f32 %v873_v36, %v819_v52  ;;  %v820_v2 = vadd.f32 %v816_v29, %v801_v48  ;;  %v889_v1 = vperm.slane %v2568_v46, 1  ;;  %v906_v45 = vperm.slane %v2574_v40, 2 }
 0x115   :  { %v2591_v49 = vpop.permute.xlu0 %922  ;;  %v891_v42 = vmul.f32 %v887_v60, %v885_v28  ;;  %v892_v55 = vmul.f32 %v888_v44, %v885_v28  ;;  %v907_v20 = vperm.slane %v2564_v38, 2  ;;  %v875_v61 = vmul.f32 %v871_v57, %v866_v8 }
 0x116   :  { %v876_v59 = vadd.f32 %v872_v33, %v818_v39  ;;  %v878_v47 = vadd.f32 %v874_v41, %v820_v2  ;;  %v893_v50 = vmul.f32 %v889_v1, %v885_v28  ;;  %v965_v15 = vperm.slane %v2598_v13, 1 }
 0x117   :  { %v3104_v22 = vperm.slane %v2598_v13, 0  ;;  %v821_v31 = vadd.f32 %v817_v25, %v802_v43  ;;  %v894_v36 = vmul.f32 %v890_v34, %v885_v28  ;;  %v896_v54 = vadd.f32 %v892_v55, %v877_v32 }
 0x118   :  { %v895_v3 = vadd.f32 %v891_v42, %v876_v59  ;;  %v909_v29 = vperm.slane %v2536_v35, 2  ;;  %v908_v52 = vperm.slane %v2568_v46, 2  ;;  %v925_v60 = vperm.slane %v2574_v40, 3 }
 0x119   :  { %v928_v57 = vperm.slane %v2536_v35, 3  ;;  %v879_v33 = vadd.f32 %v875_v61, %v821_v31  ;;  %v910_v44 = vmul.f32 %v906_v45, %v2553_v14  ;;  %v911_v56 = vmul.f32 %v907_v20, %v2553_v14 }
 0x11a   :  { %v897_v34 = vadd.f32 %v893_v50, %v878_v47  ;;  %v926_v25 = vperm.slane %v2564_v38, 3  ;;  %v913_v55 = vmul.f32 %v909_v29, %v2553_v14  ;;  %v912_v43 = vmul.f32 %v908_v52, %v2553_v14 }
 0x11b   :  { %v898_v35 = vadd.f32 %v894_v36, %v879_v33  ;;  %v914_v39 = vadd.f32 %v910_v44, %v895_v3  ;;  %v915_v32 = vadd.f32 %v911_v56, %v896_v54  ;;  %v3103_v2 = vperm.slane %v2598_v13, 2 }
 0x11c   :  { %v949_v8 = vpop.permute.xlu1 %948  ;;  %v929_v1 = vmul.f32 %v925_v60, %v2591_v49  ;;  %v930_v45 = vmul.f32 %v926_v25, %v2591_v49  ;;  %v3102_v61 = vperm.slane %v2598_v13, 3  ;;  %v916_v59 = vadd.f32 %v912_v43, %v897_v34 }
 0x11d   :  { %v953_v48 = vpop.permute.xlu0 %952  ;;  %v959_v28 = vsel %vm3105_vm7, %v949_v8, %v951_v30  ;;  %v927_v47 = vperm.slane %v2568_v46, 3  ;;  %v917_v14 = vadd.f32 %v913_v55, %v898_v35  ;;  %v932_v52 = vmul.f32 %v928_v57, %v2591_v49 }
 0x11e   :  { %v958_v41 = vsel %vm3105_vm7, %v951_v30, %v953_v48  ;;  %v2623_v40 = vmul.f32 %v3104_v22, %v959_v28  ;;  %v981_v30 = vpop.permute.xlu2 %980  ;;  %v933_v36 = vadd.f32 %v929_v1, %v914_v39  ;;  %v934_v3 = vadd.f32 %v930_v45, %v915_v32 }
 0x11f   :  { %v2627_v42 = vmul.f32 %v965_v15, %v958_v41  ;;  %v931_v29 = vmul.f32 %v927_v47, %v2591_v49  ;;  %v936_v39 = vadd.f32 %v932_v52, %v917_v14 }
 0x120   :  { %v983_v38 = vperm.slane %v2623_v40, 0  ;;  %v1002_v60 = vperm.slane %v2623_v40, 1  ;;  %v1040_v32 = vperm.slane %v2623_v40, 3 }
 0x121   :  { %v984_v20 = vperm.slane %v2627_v42, 0  ;;  %v1003_v31 = vperm.slane %v2627_v42, 1  ;;  %v935_v57 = vadd.f32 %v931_v29, %v916_v59  ;;  %v1022_v45 = vperm.slane %v2627_v42, 2 }
 0x122   :  { %v987_v50 = vmul.f32 %v983_v38, %v981_v30  ;;  %v1021_v38 = vperm.slane %v2623_v40, 2 }
 0x123   :  { %v988_v54 = vmul.f32 %v984_v20, %v981_v30 }
 0x124   :  { %v955_v33 = vpop.permute.xlu1 %954  ;;  %v991_v56 = vadd.f32 %v987_v50, %v933_v36 }
 0x125   :  { %v1000_v44 = vpop.permute.xlu0 %999  ;;  %v992_v28 = vadd.f32 %v988_v54, %v934_v3  ;;  %v957_v46 = vsel %vm3105_vm7, %v953_v48, %v955_v33  ;;  %v960_v34 = vsel %vm3105_vm7, %v955_v33, %v949_v8  ;;  %v1041_v48 = vperm.slane %v2627_v42, 3 }
 0x126   :  { %v1006_v25 = vmul.f32 %v1002_v60, %v1000_v44  ;;  %v1007_v41 = vmul.f32 %v1003_v31, %v1000_v44  ;;  %v974_v35 = vmul.f32 %v3103_v2, %v957_v46  ;;  %v975_v49 = vmul.f32 %v3102_v61, %v960_v34  ;;  %v1038_v2 = vpop.permute.xlu2 %1037 }
 0x128   :  { %v985_v55 = vperm.slane %v974_v35, 0  ;;  %v986_v43 = vperm.slane %v975_v49, 0  ;;  %v1004_v1 = vperm.slane %v974_v35, 1  ;;  %v1005_v8 = vperm.slane %v975_v49, 1 }
 0x129   :  { %v1010_v20 = vadd.f32 %v1006_v25, %v991_v56  ;;  %v1011_v47 = vadd.f32 %v1007_v41, %v992_v28  ;;  %v1042_v36 = vperm.slane %v974_v35, 3  ;;  %v1043_v3 = vperm.slane %v975_v49, 3 }
 0x12a   :  { %v989_v50 = vmul.f32 %v985_v55, %v981_v30  ;;  %v990_v31 = vmul.f32 %v986_v43, %v981_v30  ;;  %v1023_v59 = vperm.slane %v974_v35, 2  ;;  %v1024_v14 = vperm.slane %v975_v49, 2 }
 0x12b   :  { %v1008_v52 = vmul.f32 %v1004_v1, %v1000_v44  ;;  %v1009_v60 = vmul.f32 %v1005_v8, %v1000_v44  ;;  %v1044_v56 = vmul.f32 %v1040_v32, %v1038_v2  ;;  %v1045_v28 = vmul.f32 %v1041_v48, %v1038_v2 }
 0x12c   :  { %v993_v54 = vadd.f32 %v989_v50, %v935_v57  ;;  %v994_v29 = vadd.f32 %v990_v31, %v936_v39  ;;  %v1019_v33 = vpop.permute.xlu1 %1018  ;;  %v1046_v41 = vmul.f32 %v1042_v36, %v1038_v2  ;;  %v1047_v55 = vmul.f32 %v1043_v3, %v1038_v2 }
 0x12d   :  { %v1025_v40 = vmul.f32 %v1021_v38, %v1019_v33  ;;  %v1026_v46 = vmul.f32 %v1022_v45, %v1019_v33  ;;  %v1027_v34 = vmul.f32 %v1023_v59, %v1019_v33  ;;  %v1028_v61 = vmul.f32 %v1024_v14, %v1019_v33  ;;  %v1056_v43 = vpop.permute.xlu0 %1055 }
 0x12e   :  { %v1012_v22 = vadd.f32 %v1008_v52, %v993_v54  ;;  %v1013_v42 = vadd.f32 %v1009_v60, %v994_v29 }
 0x12f   :  { %v1029_v25 = vadd.f32 %v1025_v40, %v1010_v20  ;;  %v1030_v30 = vadd.f32 %v1026_v46, %v1011_v47 }
 0x130   :  { %v1031_v35 = vadd.f32 %v1027_v34, %v1012_v22  ;;  %v1032_v49 = vadd.f32 %v1028_v61, %v1013_v42 }
 0x131   :  { %v1048_v57 = vadd.f32 %v1044_v56, %v1029_v25  ;;  %v1049_v39 = vadd.f32 %v1045_v28, %v1030_v30 }
 0x132   :  { %v1050_v44 = vadd.f32 %v1046_v41, %v1031_v35  ;;  %v1051_v1 = vadd.f32 %v1047_v55, %v1032_v49 }
 0x133   :  { %v2654_v38 = vadd.f32 %v1056_v43, %v1048_v57  ;;  %v2656_v8 = vadd.f32 %v1056_v43, %v1049_v39 }
 0x134   :  { %v2658_v45 = vadd.f32 %v1056_v43, %v1050_v44  ;;  %v2660_v50 = vadd.f32 %v1056_v43, %v1051_v1  ;;  %v1801_v1 = vld [vmem:[%s3086_s3 + $0x3c] sm:$0xf] }
 0x135   :  { %v1783_v32 = vmul.f32 -1.442695, %v2654_v38  ;;  %v1784_v48 = vmul.f32 -1.442695, %v2656_v8 }
 0x136   :  { %v1785_v22 = vmul.f32 -1.442695, %v2658_v45  ;;  %v1786_v2 = vmul.f32 -1.442695, %v2660_v50 }
 0x137   :  { %1821 = vpow2.f32 %v1783_v32 }
 0x138   :  { %1823 = vpow2.f32 %v1784_v48 }
 0x139   :  { %1825 = vpow2.f32 %v1785_v22 }
 0x13a   :  { %1827 = vpow2.f32 %v1786_v2 }
 0x13d   :  { %v1822_v61 = vpop.eup %1821 }
 0x13e   :  { %v1824_v20 = vpop.eup %1823  ;;  %v1074_v47 = vadd.f32 1.0, %v1822_v61 }
 0x13f   :  { %v1826_v31 = vpop.eup %1825  ;;  %v1075_v36 = vadd.f32 1.0, %v1824_v20 }
 0x140   :  { %v1828_v3 = vpop.eup %1827  ;;  %v1076_v59 = vadd.f32 1.0, %v1826_v31  ;;  %1829 = vrcp.f32 %v1074_v47  ;;  %v1087_v54 = vand.u32 2147483647, %v1074_v47  ;;  %v1089_v29 = vand.u32 2147483648, %v1074_v47 }
 0x141   :  { %v2666_v14 = vadd.f32 1.0, %v1828_v3  ;;  %1831 = vrcp.f32 %v1075_v36  ;;  %vm1083_vm8 = vweird.f32 %v1074_v47  ;;  %vm1098_vm9 = vweird.f32 %v1075_v36 }
 0x142   :  { %1833 = vrcp.f32 %v1076_v59  ;;  %v1102_v34 = vand.u32 2147483647, %v1075_v36  ;;  %v1104_v42 = vand.u32 2147483648, %v1075_v36  ;;  %vm2669_vm10 = vcmp.eq.f32.partialorder %v1087_v54, 8.507059e+37 }
 0x143   :  { %1835 = vrcp.f32 %v2666_v14  ;;  %v1090_v25 = vor.u32 1.1754944e-38, %v1089_v29  ;;  %vm1113_vm11 = vweird.f32 %v1076_v59  ;;  %v1117_v35 = vand.u32 2147483647, %v1076_v59 }
 0x144   :  { %v1119_v49 = vand.u32 2147483648, %v1076_v59  ;;  %vm2674_vm14 = vcmp.eq.f32.partialorder %v1102_v34, 8.507059e+37  ;;  %v1105_v32 = vor.u32 1.1754944e-38, %v1104_v42  ;;  %vm1128_vm5 = vweird.f32 %v2666_v14 }
 0x145   :  { %vm2679_vm6 = vcmp.eq.f32.partialorder %v1117_v35, 8.507059e+37  ;;  %v1134_v34 = vand.u32 2147483648, %v2666_v14  ;;  %v1798_v35 = vld [vmem:[%s3086_s3 + $0x30] sm:$0xf] }
 0x146   :  { %v1830_v52 = vpop.eup %1829  ;;  %v1120_v31 = vor.u32 1.1754944e-38, %v1119_v49  ;;  %v1799_v49 = vld [vmem:[%s3086_s3 + $0x34] sm:$0xf] }
 0x147   :  { %v1832_v60 = vpop.eup %1831  ;;  %v1079_v33 = vmul.f32 %v1830_v52, %v1074_v47  ;;  %vm1084_vm12 = vweird.f32 %v1830_v52  ;;  %v1132_v47 = vand.u32 2147483647, %v2666_v14 }
 0x148   :  { %v1834_v40 = vpop.eup %1833  ;;  %v1094_v46 = vmul.f32 %v1832_v60, %v1075_v36  ;;  %vm1099_vm13 = vweird.f32 %v1832_v60  ;;  %vm1085_vm7 = vmor %vm1083_vm8, %vm1084_vm12 }
 0x149   :  { %v1080_v56 = vsub.f32 1.0, %v1079_v33  ;;  %v1109_v30 = vmul.f32 %v1834_v40, %v1076_v59  ;;  %v1836_v41 = vpop.eup %1835  ;;  %vm1114_vm15 = vweird.f32 %v1834_v40  ;;  %vm1100_vm4 = vmor %vm1098_vm9, %vm1099_vm13 }
 0x14a   :  { %v1095_v55 = vsub.f32 1.0, %v1094_v46  ;;  %v1124_v43 = vmul.f32 %v1836_v41, %v2666_v14  ;;  %vm1129_vm3 = vweird.f32 %v1836_v41  ;;  %vm1115_vm8 = vmor %vm1113_vm11, %vm1114_vm15  ;;  %vm3129_vm11 = vcmp.lt.s32.totalorder %v2060_v63, 113 }
 0x14b   :  { %v1081_v57 = vmul.f32 %v1830_v52, %v1080_v56  ;;  %v1110_v39 = vsub.f32 1.0, %v1109_v30  ;;  %vm3133_vm12 = vmmov %vm3129_vm11  ;;  %vm3136_vm15 = vcmp.lt.s32.totalorder %v2060_v63, 112 }
 0x14c   :  { %v1096_v44 = vmul.f32 %v1832_v60, %v1095_v55  ;;  %v1125_v2 = vsub.f32 1.0, %v1124_v43  ;;  %v1797_v55 = vld [vmem:[%s3086_s3 + $0x2c] sm:$0xf]  ;;  %vm3134_vm13 = vmmov %vm3129_vm11 }
 0x14d   :  { %v1082_v48 = vadd.f32 %v1830_v52, %v1081_v57  ;;  %v1111_v22 = vmul.f32 %v1834_v40, %v1110_v39  ;;  %v2782_v57 = vpop.permute.xlu2 %1161  ;;  %v2784_v39 = vpop.permute.xlu0 %1176 }
 0x14e   :  { %v1097_v61 = vadd.f32 %v1832_v60, %v1096_v44  ;;  %v1126_v29 = vmul.f32 %v1836_v41, %v1125_v2  ;;  %v1800_v44 = vld [vmem:[%s3086_s3 + $0x38] sm:$0xf] }
 0x14f   :  { %v1086_v3 = vsel %vm1085_vm7, %v1830_v52, %v1082_v48  ;;  %v1112_v54 = vadd.f32 %v1834_v40, %v1111_v22  ;;  %vm1133_vm7 = vcmp.eq.f32.partialorder %v1132_v47, 8.507059e+37  ;;  %v1803_v48 = vld [vmem:[%s3086_s3 + $0x44] sm:$0xf]  ;;  %v1607_v22 = vld [vmem:[%s3087_s4] sm:$0xf] }
 0x150   :  { %v1091_v33 = vsel %vm2669_vm10, %v1090_v25, %v1086_v3  ;;  %v1101_v46 = vsel %vm1100_vm4, %v1832_v60, %v1097_v61  ;;  %v1127_v52 = vadd.f32 %v1836_v41, %v1126_v29  ;;  %vm1130_vm4 = vmor %vm1128_vm5, %vm1129_vm3  ;;  %v1794_v25 = vld [vmem:[%s3086_s3 + $0x20] sm:$0xf]  ;;  %vm3124_vm5 = vcmp.lt.s32.totalorder %v2060_v63, 127 }
 0x151   :  { %v1106_v42 = vsel %vm2674_vm14, %v1105_v32, %v1101_v46  ;;  %v1116_v56 = vsel %vm1115_vm8, %v1834_v40, %v1112_v54  ;;  %v2693_v36 = vmul.f32 %v1091_v33, %v2654_v38  ;;  %v1135_v40 = vor.u32 1.1754944e-38, %v1134_v34  ;;  %vm3126_vm9 = vmmov %vm3124_vm5 }
 0x152   :  { %v1121_v30 = vsel %vm2679_vm6, %v1120_v31, %v1116_v56  ;;  %v2700_v59 = vmul.f32 %v1106_v42, %v2656_v8  ;;  %v1131_v60 = vsel %vm1130_vm4, %v1836_v41, %v1127_v52  ;;  %v1792_v8 = vld [vmem:[%s3086_s3 + $0x18] sm:$0xf]  ;;  %v1796_v41 = vld [vmem:[%s3086_s3 + $0x28] sm:$0xf]  ;;  %vm3125_vm6 = vmmov %vm3124_vm5 }
 0x153   :  { %v2703_v28 = vmul.f32 %v1121_v30, %v2658_v45  ;;  %1142 = vrot.lane.b32.xlu1 %v2693_v36, %s1880_s29  ;;  %v1136_v38 = vsel %vm1133_vm7, %v1135_v40, %v1131_v60  ;;  %v1793_v45 = vld [vmem:[%s3086_s3 + $0x1c] sm:$0xf]  ;;  %v1802_v40 = vld [vmem:[%s3086_s3 + $0x40] sm:$0xf]  ;;  %vm3127_vm10 = vmmov %vm3124_vm5 }
 0x154   :  { %1144 = vrot.lane.b32.xlu2 %v2700_v59, %s1880_s29  ;;  %v2712_v14 = vmul.f32 %v1136_v38, %v2660_v50  ;;  %v1795_v50 = vld [vmem:[%s3086_s3 + $0x24] sm:$0xf]  ;;  %vm3135_vm14 = vmmov %vm3129_vm11  ;;  %s1888_s3 = smov [#allocation2]  }
 0x155   :  { %1146 = vrot.lane.b32.xlu0 %v2703_v28, %s1880_s29  ;;  %v2792_v43 = vpop.permute.xlu2 %1211  ;;  %v2802_v32 = vpop.permute.xlu0 %1230  ;;  %vm3137_vm8 = vmmov %vm3136_vm15 }
 0x156   :  { %vm3138_vm4 = vmmov %vm3137_vm8 }
 0x157   :  { %vm3139_vm7 = vmmov %vm3138_vm4 }
 0x15b   :  { %1148 = vrot.lane.b32.xlu1 %v2712_v14, %s1880_s29 }
 0x15c   :  { %1193 = vrot.lane.b32.xlu2 %v2700_v59, %s1881_s0 }
 0x15d   :  { %1195 = vrot.lane.b32.xlu0 %v2703_v28, %s1881_s0  ;;  %v2810_v2 = vpop.permute.xlu2 %1265  ;;  %v2814_v61 = vpop.permute.xlu0 %1284 }
 0x163   :  { %1191 = vrot.lane.b32.xlu1 %v2693_v36, %s1881_s0 }
 0x164   :  { %1247 = vrot.lane.b32.xlu2 %v2700_v59, %s1882_s16 }
 0x165   :  { %1249 = vrot.lane.b32.xlu0 %v2703_v28, %s1882_s16 }
 0x16b   :  { %1197 = vrot.lane.b32.xlu1 %v2712_v14, %s1881_s0 }
 0x16c   :  { %1301 = vrot.lane.b32.xlu2 %v2700_v59, %s1883_s27 }
 0x16d   :  { %1303 = vrot.lane.b32.xlu0 %v2703_v28, %s1883_s27 }
 0x173   :  { %1245 = vrot.lane.b32.xlu1 %v2693_v36, %s1882_s16 }
 0x174   :  { %1319 = vperm.xlu2 %1818, %v1792_v8  }
 0x175   :  { %1338 = vperm.xlu0 %1819, %v1793_v45  }
 0x17b   :  { %1251 = vrot.lane.b32.xlu1 %v2712_v14, %s1882_s16 }
 0x17c   :  { %1376 = vperm.xlu2 %1818, %v1795_v50  }
 0x17d   :  { %1391 = vrot.lane.b32.xlu0 %v2693_v36, %s1884_s22 }
 0x183   :  { %1299 = vrot.lane.b32.xlu1 %v2693_v36, %s1883_s27 }
 0x184   :  { %1395 = vrot.lane.b32.xlu2 %v2703_v28, %s1884_s22 }
 0x185   :  { %1397 = vrot.lane.b32.xlu0 %v2712_v14, %s1884_s22 }
 0x18b   :  { %1305 = vrot.lane.b32.xlu1 %v2712_v14, %s1883_s27 }
 0x18c   :  { %1447 = vrot.lane.b32.xlu2 %v2700_v59, %s1885_s9 }
 0x18d   :  { %1449 = vrot.lane.b32.xlu0 %v2703_v28, %s1885_s9 }
 0x193   :  { %1357 = vperm.xlu1 %1820, %v1794_v25  }
 0x194   :  { %1411 = vperm.xlu2 %1818, %v1796_v41  }
 0x195   :  { %1430 = vperm.xlu0 %1819, %v1797_v55  }
 0x19b   :  { %1393 = vrot.lane.b32.xlu1 %v2700_v59, %s1884_s22 }
 0x19c   :  { %1501 = vrot.lane.b32.xlu2 %v2700_v59, %s1886_s21 }
 0x19d   :  { %1503 = vrot.lane.b32.xlu0 %v2703_v28, %s1886_s21 }
 0x1a3   :  { %1445 = vrot.lane.b32.xlu1 %v2693_v36, %s1885_s9 }
 0x1a4   :  { %1465 = vperm.xlu2 %1818, %v1798_v35  }
 0x1a5   :  { %1484 = vperm.xlu0 %1819, %v1799_v49  }
 0x1ab   :  { %1451 = vrot.lane.b32.xlu1 %v2712_v14, %s1885_s9 }
 0x1ac   :  { %1555 = vrot.lane.b32.xlu2 %v2700_v59, %s1887_s14 }
 0x1ad   :  { %1557 = vrot.lane.b32.xlu0 %v2703_v28, %s1887_s14 }
 0x1ae   :  { %v1145_v20 = vpop.permute.xlu2 %1144 }
 0x1b3   :  { %1499 = vrot.lane.b32.xlu1 %v2693_v36, %s1886_s21 }
 0x1b4   :  { %1519 = vperm.xlu2 %1818, %v1800_v44  }
 0x1b5   :  { %1538 = vperm.xlu0 %1819, %v1801_v1  }
 0x1b6   :  { %v1194_v46 = vpop.permute.xlu2 %1193 }
 0x1bb   :  { %1505 = vrot.lane.b32.xlu1 %v2712_v14, %s1886_s21 }
 0x1bc   :  { %1592 = vperm.xlu2 %1818, %v1803_v48  }
 0x1bd   :  { %1610 = vperm.xlu0 %1819, %v1607_v22  }
 0x1be   :  { %v1248_v22 = vpop.permute.xlu2 %1247 }
 0x1c3   :  { %1553 = vrot.lane.b32.xlu1 %v2693_v36, %s1887_s14 }
 0x1c5   :  { %v1143_v31 = vpop.permute.xlu1 %1142 }
 0x1c6   :  { %v1152_v3 = vsel %vm49_vm0, %v1143_v31, %v1145_v20 }
 0x1c7   :  { %v1147_v54 = vpop.permute.xlu0 %1146  ;;  %v1155_v30 = vmul.f32 %v1152_v3, %v57_v6 }
 0x1c8   :  { %v1151_v29 = vsel %vm49_vm0, %v1145_v20, %v1147_v54 }
 0x1c9   :  { %v1156_v33 = vmul.f32 %v1151_v29, %v58_v7  ;;  %v1165_v50 = vperm.slane %v1155_v30, 0  ;;  %v1180_v25 = vperm.slane %v1155_v30, 1 }
 0x1cb   :  { %1559 = vrot.lane.b32.xlu1 %v2712_v14, %s1887_s14  ;;  %v1166_v34 = vperm.slane %v1156_v33, 0  ;;  %v1181_v42 = vperm.slane %v1156_v33, 1  ;;  %v1184_v20 = vmul.f32 %v1180_v25, %v2784_v39  ;;  %s1730_s14 = sshll.u32 %s1888_s3, 4  ;;  %s1731_s14 = int_to_ptr.vmem [resolvable:$true] %s1730_s14 }
 0x1cd   :  { %v1149_v47 = vpop.permute.xlu1 %1148  ;;  %v1170_v38 = vmul.f32 %v1166_v34, %v2782_v57  ;;  %v1185_v8 = vmul.f32 %v1181_v42, %v2784_v39 }
 0x1ce   :  { %v1150_v56 = vsel %vm49_vm0, %v1147_v54, %v1149_v47  ;;  %v1153_v52 = vsel %vm49_vm0, %v1149_v47, %v1143_v31  ;;  %vm3116_vm0 = vcmp.lt.s32.totalorder %v2060_v63, 1 }
 0x1cf   :  { %v1196_v60 = vpop.permute.xlu0 %1195  ;;  %v1154_v6 = vmul.f32 %v1153_v52, %v56_v4  ;;  %v1157_v35 = vmul.f32 %v1150_v56, %v59_v5  ;;  %v1189_v44 = vadd.f32 %v1185_v8, %v1170_v38  ;;  %vm3120_vm3 = vmmov %vm3116_vm0 }
 0x1d0   :  { %v1200_v7 = vsel %vm158_vm2, %v1194_v46, %v1196_v60 }
 0x1d1   :  { %v1205_v45 = vmul.f32 %v1200_v7, %v168_v24  ;;  %v1169_v24 = vmul.f32 %v1165_v50, %v2782_v57  ;;  %v1164_v31 = vperm.slane %v1154_v6, 0  ;;  %v1167_v29 = vperm.slane %v1157_v35, 0 }
 0x1d2   :  { %v1179_v33 = vperm.slane %v1154_v6, 1  ;;  %v1182_v47 = vperm.slane %v1157_v35, 1 }
 0x1d3   :  { %1573 = vperm.xlu1 %1820, %v1802_v40   ;;  %v1216_v41 = vperm.slane %v1205_v45, 0  ;;  %v1235_v55 = vperm.slane %v1205_v45, 1  ;;  %v1188_v7 = vadd.f32 %v1184_v20, %v1169_v24  ;;  %v1168_v40 = vmul.f32 %v1164_v31, %v2782_v57 }
 0x1d4   :  { %v1183_v8 = vmul.f32 %v1179_v33, %v2784_v39  ;;  %v1186_v45 = vmul.f32 %v1182_v47, %v2784_v39 }
 0x1d5   :  { %v1192_v49 = vpop.permute.xlu1 %1191  ;;  %v1220_v1 = vmul.f32 %v1216_v41, %v2792_v43  ;;  %v1239_v54 = vmul.f32 %v1235_v55, %v2802_v32 }
 0x1d6   :  { %v1201_v48 = vsel %vm158_vm2, %v1192_v49, %v1194_v46 }
 0x1d7   :  { %v1250_v4 = vpop.permute.xlu0 %1249  ;;  %v1224_v3 = vadd.f32 %v1220_v1, %v1189_v44  ;;  %v1204_v0 = vmul.f32 %v1201_v48, %v167_v19  ;;  %v1171_v19 = vmul.f32 %v1167_v29, %v2782_v57 }
 0x1d8   :  { %v1254_v5 = vsel %vm273_vm1, %v1248_v22, %v1250_v4 }
 0x1d9   :  { %v1259_v46 = vmul.f32 %v1254_v5, %v283_v26  ;;  %v1243_v34 = vadd.f32 %v1239_v54, %v1224_v3  ;;  %v1215_v42 = vperm.slane %v1204_v0, 0  ;;  %v1234_v56 = vperm.slane %v1204_v0, 1  ;;  %v1302_v3 = vpop.permute.xlu2 %1301 }
 0x1da   :  { %v1187_v54 = vadd.f32 %v1183_v8, %v1168_v40  ;;  %v1190_v0 = vadd.f32 %v1186_v45, %v1171_v19 }
 0x1db   :  { %v1270_v52 = vperm.slane %v1259_v46, 0  ;;  %v1289_v30 = vperm.slane %v1259_v46, 1  ;;  %v1219_v38 = vmul.f32 %v1215_v42, %v2792_v43  ;;  %v1238_v6 = vmul.f32 %v1234_v56, %v2802_v32 }
 0x1dd   :  { %v1274_v50 = vmul.f32 %v1270_v52, %v2810_v2  ;;  %v1198_v25 = vpop.permute.xlu1 %1197  ;;  %v1223_v26 = vadd.f32 %v1219_v38, %v1188_v7  ;;  %v1293_v44 = vmul.f32 %v1289_v30, %v2814_v61 }
 0x1de   :  { %v1199_v41 = vsel %vm158_vm2, %v1196_v60, %v1198_v25  ;;  %v1202_v55 = vsel %vm158_vm2, %v1198_v25, %v1192_v49  ;;  %vm3119_vm2 = vmmov %vm3116_vm0 }
 0x1df   :  { %v1278_v35 = vadd.f32 %v1274_v50, %v1243_v34  ;;  %v1203_v57 = vmul.f32 %v1202_v55, %v166_v16  ;;  %v1206_v39 = vmul.f32 %v1199_v41, %v169_v18  ;;  %v1242_v1 = vadd.f32 %v1238_v6, %v1223_v26  ;;  %v1304_v29 = vpop.permute.xlu0 %1303 }
 0x1e1   :  { %v2873_v48 = vadd.f32 %v1293_v44, %v1278_v35  ;;  %v1214_v24 = vperm.slane %v1203_v57, 0  ;;  %v1217_v20 = vperm.slane %v1206_v39, 0  ;;  %v1233_v31 = vperm.slane %v1203_v57, 1  ;;  %v1320_v40 = vpop.permute.xlu2 %1319 }
 0x1e2   :  { %v1236_v60 = vperm.slane %v1206_v39, 1 }
 0x1e3   :  { %v1218_v49 = vmul.f32 %v1214_v24, %v2792_v43  ;;  %v1221_v5 = vmul.f32 %v1217_v20, %v2792_v43  ;;  %v1237_v53 = vmul.f32 %v1233_v31, %v2802_v32 }
 0x1e4   :  { %v1240_v18 = vmul.f32 %v1236_v60, %v2802_v32 }
 0x1e5   :  { %v1222_v33 = vadd.f32 %v1218_v49, %v1187_v54  ;;  %v1225_v16 = vadd.f32 %v1221_v5, %v1190_v0  ;;  %v1246_v47 = vpop.permute.xlu1 %1245  ;;  %v1308_v5 = vsel %vm3116_vm0, %v1302_v3, %v1304_v29 }
 0x1e6   :  { %v1255_v46 = vsel %vm273_vm1, %v1246_v47, %v1248_v22 }
 0x1e7   :  { %v1241_v34 = vadd.f32 %v1237_v53, %v1222_v33  ;;  %v1244_v42 = vadd.f32 %v1240_v18, %v1225_v16  ;;  %v1258_v56 = vmul.f32 %v1255_v46, %v282_v12  ;;  %v2885_v8 = vpop.permute.xlu0 %1338 }
 0x1e9   :  { %v1269_v52 = vperm.slane %v1258_v56, 0  ;;  %v1288_v30 = vperm.slane %v1258_v56, 1  ;;  %v2901_v24 = vpop.permute.xlu2 %1376  ;;  %v3121_v56 = vperm.slane %v2268_v23, 1 }
 0x1eb   :  { %v1273_v43 = vmul.f32 %v1269_v52, %v2810_v2  ;;  %v1292_v7 = vmul.f32 %v1288_v30, %v2814_v61  ;;  %v3122_v30 = vperm.slane %v2268_v23, 3 }
 0x1ed   :  { %v1277_v38 = vadd.f32 %v1273_v43, %v1242_v1  ;;  %v1252_v19 = vpop.permute.xlu1 %1251 }
 0x1ee   :  { %v1253_v32 = vsel %vm273_vm1, %v1250_v4, %v1252_v19  ;;  %v1256_v22 = vsel %vm273_vm1, %v1252_v19, %v1246_v47  ;;  %vm3118_vm1 = vmmov %vm3116_vm0  ;;  %vm3144_vm0 = vcmp.lt.s32.totalorder %v2060_v63, 111 }
 0x1ef   :  { %v2891_v45 = vadd.f32 %v1292_v7, %v1277_v38  ;;  %v1257_v12 = vmul.f32 %v1256_v22, %v281_v21  ;;  %v1260_v50 = vmul.f32 %v1253_v32, %v284_v17  ;;  %v1392_v17 = vpop.permute.xlu0 %1391  ;;  %v3123_v7 = vperm.slane %v2268_v23, 0 }
 0x1f1   :  { %v1268_v25 = vperm.slane %v1257_v12, 0  ;;  %v1271_v26 = vperm.slane %v1260_v50, 0  ;;  %v1287_v6 = vperm.slane %v1257_v12, 1  ;;  %v1290_v41 = vperm.slane %v1260_v50, 1  ;;  %v1396_v31 = vpop.permute.xlu2 %1395 }
 0x1f2   :  { %v1379_v12 = vperm.slane %v2693_v36, 1  ;;  %v1380_v50 = vperm.slane %v2700_v59, 1 }
 0x1f3   :  { %v1272_v55 = vmul.f32 %v1268_v25, %v2810_v2  ;;  %v1275_v35 = vmul.f32 %v1271_v26, %v2810_v2  ;;  %v1291_v4 = vmul.f32 %v1287_v6, %v2814_v61  ;;  %v1294_v39 = vmul.f32 %v1290_v41, %v2814_v61 }
 0x1f4   :  { %v3117_v61 = vperm.slane %v2268_v23, 2  ;;  %v1360_v6 = vperm.slane %v2693_v36, 0  ;;  %v1361_v23 = vperm.slane %v2700_v59, 0 }
 0x1f5   :  { %v1276_v44 = vadd.f32 %v1272_v55, %v1241_v34  ;;  %v1279_v57 = vadd.f32 %v1275_v35, %v1244_v42  ;;  %v1300_v1 = vpop.permute.xlu1 %1299 }
 0x1f6   :  { %v1313_v33 = vmul.f32 %v1308_v5, %v3117_v61  ;;  %v1309_v53 = vsel %vm3118_vm1, %v1300_v1, %v1302_v3  ;;  %v1382_v5 = vperm.slane %v2712_v14, 1  ;;  %vm3145_vm1 = vmmov %vm3144_vm0 }
 0x1f7   :  { %v1295_v21 = vadd.f32 %v1291_v4, %v1276_v44  ;;  %v1298_v9 = vadd.f32 %v1294_v39, %v1279_v57  ;;  %v1398_v60 = vpop.permute.xlu0 %1397  ;;  %v1312_v52 = vmul.f32 %v1309_v53, %v3121_v56 }
 0x1f8   :  { %v1324_v42 = vperm.slane %v1313_v33, 0  ;;  %v1343_v25 = vperm.slane %v1313_v33, 1  ;;  %v1399_v61 = vsel %vm3125_vm6, %v1396_v31, %v1398_v60  ;;  %v1402_v59 = vsel %vm3126_vm9, %v1398_v60, %v1392_v17 }
 0x1f9   :  { %v2905_v0 = vpop.permute.xlu2 %1447  ;;  %v1323_v19 = vperm.slane %v1312_v52, 0  ;;  %v1342_v44 = vperm.slane %v1312_v52, 1 }
 0x1fa   :  { %v1328_v38 = vmul.f32 %v1324_v42, %v1320_v40  ;;  %v1347_v4 = vmul.f32 %v1343_v25, %v2885_v8  ;;  %v3128_v42 = vperm.slane %v2371_v62, 1 }
 0x1fb   :  { %v1327_v55 = vmul.f32 %v1323_v19, %v1320_v40 }
 0x1fc   :  { %v1332_v41 = vadd.f32 %v1328_v38, %v2873_v48  ;;  %v1362_v48 = vperm.slane %v2703_v28, 0  ;;  %v3132_v38 = vperm.slane %v2371_v62, 0 }
 0x1fd   :  { %v1306_v20 = vpop.permute.xlu1 %1305  ;;  %v1331_v53 = vadd.f32 %v1327_v55, %v2891_v45 }
 0x1fe   :  { %v1307_v18 = vsel %vm3119_vm2, %v1304_v29, %v1306_v20  ;;  %v1310_v47 = vsel %vm3120_vm3, %v1306_v20, %v1300_v1  ;;  %v1381_v20 = vperm.slane %v2703_v28, 1  ;;  %v1383_v28 = vmul.f32 %v1379_v12, %v2901_v24  ;;  %vm3146_vm2 = vmmov %vm3144_vm0 }
 0x1ff   :  { %v2907_v2 = vpop.permute.xlu0 %1449  ;;  %v1314_v43 = vmul.f32 %v1307_v18, %v3122_v30  ;;  %v1311_v3 = vmul.f32 %v1310_v47, %v3123_v7  ;;  %v1351_v52 = vadd.f32 %v1347_v4, %v1332_v41  ;;  %v3131_v7 = vperm.slane %v2371_v62, 3  ;;  %vm3147_vm3 = vmmov %vm3144_vm0 }
 0x200   :  { %v1384_v41 = vmul.f32 %v1380_v50, %v2901_v24  ;;  %v1385_v50 = vmul.f32 %v1381_v20, %v2901_v24 }
 0x201   :  { %v2913_v16 = vpop.permute.xlu2 %1411  ;;  %v1325_v29 = vperm.slane %v1314_v43, 0  ;;  %v1322_v32 = vperm.slane %v1311_v3, 0  ;;  %v1344_v36 = vperm.slane %v1314_v43, 1  ;;  %v1341_v33 = vperm.slane %v1311_v3, 1 }
 0x202   :  { %v1406_v3 = vmul.f32 %v1402_v59, %v3131_v7 }
 0x203   :  { %v1329_v35 = vmul.f32 %v1325_v29, %v1320_v40  ;;  %v1326_v57 = vmul.f32 %v1322_v32, %v1320_v40  ;;  %v1363_v40 = vperm.slane %v2712_v14, 0  ;;  %v1348_v60 = vmul.f32 %v1344_v36, %v2885_v8 }
 0x204   :  { %v1454_v14 = vsel %vm3129_vm11, %v2905_v0, %v2907_v2 }
 0x205   :  { %v2903_v54 = vpop.permute.xlu1 %1357  ;;  %v1333_v18 = vadd.f32 %v1329_v35, %v1298_v9  ;;  %v1330_v30 = vadd.f32 %v1326_v57, %v1295_v21  ;;  %v1345_v21 = vmul.f32 %v1341_v33, %v2885_v8 }
 0x206   :  { %v1365_v45 = vmul.f32 %v1361_v23, %v2903_v54  ;;  %v1366_v9 = vmul.f32 %v1362_v48, %v2903_v54  ;;  %v1367_v12 = vmul.f32 %v1363_v40, %v2903_v54  ;;  %v2976_v23 = vmul.f32 %v1454_v14, %v735_v37 }
 0x207   :  { %v2923_v34 = vpop.permute.xlu0 %1430  ;;  %v1352_v32 = vadd.f32 %v1348_v60, %v1333_v18  ;;  %v1349_v35 = vadd.f32 %v1345_v21, %v1330_v30  ;;  %v1364_v4 = vmul.f32 %v1360_v6, %v2903_v54  ;;  %v1386_v54 = vmul.f32 %v1382_v5, %v2901_v24 }
 0x208   :  { %v1417_v6 = vperm.slane %v1406_v3, 0  ;;  %v1469_v59 = vperm.slane %v2976_v23, 0 }
 0x209   :  { %v2933_v26 = vpop.permute.xlu2 %1501  ;;  %v1368_v33 = vadd.f32 %v1364_v4, %v1349_v35  ;;  %v3141_v4 = vperm.slane %v2434_v11, 2 }
 0x20d   :  { %v1394_v49 = vpop.permute.xlu1 %1393 }
 0x20e   :  { %v1400_v39 = vsel %vm3124_vm5, %v1394_v49, %v1396_v31  ;;  %v1401_v47 = vsel %vm3127_vm10, %v1392_v17, %v1394_v49  ;;  %v1346_v31 = vmul.f32 %v1342_v44, %v2885_v8  ;;  %v3130_v49 = vperm.slane %v2371_v62, 2 }
 0x20f   :  { %v2941_v1 = vpop.permute.xlu0 %1503  ;;  %v1404_v56 = vmul.f32 %v1400_v39, %v3128_v42  ;;  %v1403_v19 = vmul.f32 %v1401_v47, %v3132_v38  ;;  %v1370_v8 = vadd.f32 %v1366_v9, %v1351_v52  ;;  %v1436_v47 = vperm.slane %v1406_v3, 1 }
 0x210   :  { %v1405_v43 = vmul.f32 %v1399_v61, %v3130_v49  ;;  %v1350_v29 = vadd.f32 %v1346_v31, %v1331_v53  ;;  %v1371_v61 = vadd.f32 %v1367_v12, %v1352_v32  ;;  %v1421_v52 = vmul.f32 %v1417_v6, %v2913_v16 }
 0x211   :  { %v1415_v25 = vperm.slane %v1404_v56, 0  ;;  %v1466_v55 = vpop.permute.xlu2 %1465  ;;  %v1414_v36 = vperm.slane %v1403_v19, 0  ;;  %v1389_v53 = vadd.f32 %v1385_v50, %v1370_v8  ;;  %v1434_v18 = vperm.slane %v1404_v56, 1 }
 0x212   :  { %v1369_v44 = vadd.f32 %v1365_v45, %v1350_v29  ;;  %v1416_v39 = vperm.slane %v1405_v43, 0  ;;  %v1435_v5 = vperm.slane %v1405_v43, 1  ;;  %v1390_v31 = vadd.f32 %v1386_v54, %v1371_v61 }
 0x213   :  { %v1418_v42 = vmul.f32 %v1414_v36, %v2913_v16  ;;  %v1433_v60 = vperm.slane %v1403_v19, 1  ;;  %v1473_v45 = vmul.f32 %v1469_v59, %v1466_v55  ;;  %v1440_v38 = vmul.f32 %v1436_v47, %v2923_v34 }
 0x214   :  { %v1388_v40 = vadd.f32 %v1384_v41, %v1369_v44  ;;  %v1425_v3 = vadd.f32 %v1421_v52, %v1390_v31  ;;  %v1439_v21 = vmul.f32 %v1435_v5, %v2923_v34  ;;  %v1508_v32 = vsel %vm3139_vm7, %v2933_v26, %v2941_v1 }
 0x215   :  { %v2921_v46 = vpop.permute.xlu1 %1445  ;;  %v1437_v29 = vmul.f32 %v1433_v60, %v2923_v34  ;;  %v3142_v8 = vperm.slane %v2434_v11, 3 }
 0x216   :  { %v1455_v62 = vsel %vm3133_vm12, %v2921_v46, %v2905_v0  ;;  %v1419_v0 = vmul.f32 %v1415_v25, %v2913_v16 }
 0x217   :  { %v2987_v48 = vpop.permute.xlu0 %1484 }
 0x218   :  { %v1423_v30 = vadd.f32 %v1419_v0, %v1388_v40 }
 0x219   :  { %v1556_v49 = vpop.permute.xlu2 %1555 }
 0x21d   :  { %v1452_v22 = vpop.permute.xlu1 %1451 }
 0x21e   :  { %v1453_v57 = vsel %vm3134_vm13, %v2907_v2, %v1452_v22  ;;  %v1456_v37 = vsel %vm3135_vm14, %v1452_v22, %v2921_v46  ;;  %v1457_v2 = vmul.f32 %v1455_v62, %v734_v51  ;;  %v1420_v22 = vmul.f32 %v1416_v39, %v2913_v16 }
 0x21f   :  { %v1459_v20 = vmul.f32 %v1453_v57, %v736_v27  ;;  %v1460_v46 = vmul.f32 %v1456_v37, %v737_v58  ;;  %v1488_v51 = vperm.slane %v2976_v23, 1  ;;  %v1387_v27 = vadd.f32 %v1383_v28, %v1368_v33  ;;  %v1558_v41 = vpop.permute.xlu0 %1557 }
 0x220   :  { %v1468_v14 = vperm.slane %v1457_v2, 0  ;;  %v1424_v10 = vadd.f32 %v1420_v22, %v1389_v53  ;;  %v1438_v58 = vmul.f32 %v1434_v18, %v2923_v34  ;;  %v3140_v23 = vperm.slane %v2434_v11, 0 }
 0x221   :  { %v1470_v56 = vperm.slane %v1459_v20, 0  ;;  %v1471_v9 = vperm.slane %v1460_v46, 0  ;;  %v1422_v43 = vadd.f32 %v1418_v42, %v1387_v27  ;;  %v1487_v39 = vperm.slane %v1457_v2, 1  ;;  %v1520_v5 = vpop.permute.xlu2 %1519 }
 0x222   :  { %v1442_v19 = vadd.f32 %v1438_v58, %v1423_v30  ;;  %v1472_v12 = vmul.f32 %v1468_v14, %v1466_v55  ;;  %v1443_v34 = vadd.f32 %v1439_v21, %v1424_v10  ;;  %v1489_v36 = vperm.slane %v1459_v20, 1 }
 0x223   :  { %v1474_v25 = vmul.f32 %v1470_v56, %v1466_v55  ;;  %v1475_v35 = vmul.f32 %v1471_v9, %v1466_v55  ;;  %v1441_v50 = vadd.f32 %v1437_v29, %v1422_v43  ;;  %v1444_v37 = vadd.f32 %v1440_v38, %v1425_v3 }
 0x224   :  { %v1477_v54 = vadd.f32 %v1473_v45, %v1442_v19  ;;  %v1490_v55 = vperm.slane %v1460_v46, 1  ;;  %v1492_v61 = vmul.f32 %v1488_v51, %v2987_v48  ;;  %v1562_v59 = vsel %vm3144_vm0, %v1556_v49, %v1558_v41 }
 0x225   :  { %v1500_v17 = vpop.permute.xlu1 %1499  ;;  %v1476_v6 = vadd.f32 %v1472_v12, %v1441_v50  ;;  %v1478_v0 = vadd.f32 %v1474_v25, %v1443_v34  ;;  %v1479_v33 = vadd.f32 %v1475_v35, %v1444_v37  ;;  %v1491_v2 = vmul.f32 %v1487_v39, %v2987_v48 }
 0x226   :  { %v1509_v7 = vsel %vm3136_vm15, %v1500_v17, %v2933_v26  ;;  %v3143_v26 = vperm.slane %v2434_v11, 1  ;;  %v1493_v20 = vmul.f32 %v1489_v36, %v2987_v48  ;;  %v1496_v22 = vadd.f32 %v1492_v61, %v1477_v54 }
 0x227   :  { %v1494_v46 = vmul.f32 %v1490_v55, %v2987_v48  ;;  %v1495_v47 = vadd.f32 %v1491_v2, %v1476_v6  ;;  %v1566_v52 = vmul.f32 %v1562_v59, %v965_v15  ;;  %v1539_v45 = vpop.permute.xlu0 %1538  ;;  %v3148_v15 = vperm.slane %v2598_v13, 0 }
 0x228   :  { %v1497_v42 = vadd.f32 %v1493_v20, %v1478_v0 }
 0x229   :  { %v1498_v31 = vadd.f32 %v1494_v46, %v1479_v33  ;;  %v1593_v36 = vpop.permute.xlu2 %1592 }
 0x22d   :  { %v1506_v24 = vpop.permute.xlu1 %1505 }
 0x22e   :  { %v1507_v16 = vsel %vm3137_vm8, %v2941_v1, %v1506_v24  ;;  %v1510_v28 = vsel %vm3138_vm4, %v1506_v24, %v1500_v17  ;;  %v1511_v17 = vmul.f32 %v1509_v7, %v3140_v23  ;;  %v1512_v1 = vmul.f32 %v1508_v32, %v3143_v26 }
 0x22f   :  { %v1513_v44 = vmul.f32 %v1507_v16, %v3141_v4  ;;  %v1514_v62 = vmul.f32 %v1510_v28, %v3142_v8  ;;  %v3150_v16 = vperm.slane %v2598_v13, 3  ;;  %v1596_v32 = vperm.slane %v1566_v52, 1 }
 0x230   :  { %v1522_v40 = vperm.slane %v1511_v17, 0  ;;  %v1523_v24 = vperm.slane %v1512_v1, 0  ;;  %v1542_v11 = vperm.slane %v1512_v1, 1  ;;  %v1541_v56 = vperm.slane %v1511_v17, 1 }
 0x231   :  { %v1524_v53 = vperm.slane %v1513_v44, 0  ;;  %v1525_v18 = vperm.slane %v1514_v62, 0  ;;  %v1543_v10 = vperm.slane %v1513_v44, 1  ;;  %v1544_v9 = vperm.slane %v1514_v62, 1 }
 0x232   :  { %v1526_v30 = vmul.f32 %v1522_v40, %v1520_v5  ;;  %v1527_v3 = vmul.f32 %v1523_v24, %v1520_v5  ;;  %v1546_v38 = vmul.f32 %v1542_v11, %v1539_v45  ;;  %v1545_v12 = vmul.f32 %v1541_v56, %v1539_v45  ;;  %v1611_v11 = vpop.permute.xlu0 %1610 }
 0x233   :  { %v1528_v27 = vmul.f32 %v1524_v53, %v1520_v5  ;;  %v1529_v60 = vmul.f32 %v1525_v18, %v1520_v5  ;;  %v1547_v25 = vmul.f32 %v1543_v10, %v1539_v45  ;;  %v1577_v4 = vperm.slane %v1566_v52, 0 }
 0x234   :  { %v1530_v21 = vadd.f32 %v1526_v30, %v1495_v47  ;;  %v1531_v63 = vadd.f32 %v1527_v3, %v1496_v22  ;;  %v1600_v55 = vmul.f32 %v1596_v32, %v1593_v36 }
 0x235   :  { %v1554_v57 = vpop.permute.xlu1 %1553  ;;  %v1532_v19 = vadd.f32 %v1528_v27, %v1497_v42  ;;  %v1533_v29 = vadd.f32 %v1529_v60, %v1498_v31 }
 0x236   :  { %v1563_v51 = vsel %vm3145_vm1, %v1554_v57, %v1556_v49  ;;  %v3149_v49 = vperm.slane %v2598_v13, 2  ;;  %v1549_v39 = vadd.f32 %v1545_v12, %v1530_v21 }
 0x237   :  { %v1565_v43 = vmul.f32 %v1563_v51, %v3148_v15  ;;  %v1551_v13 = vadd.f32 %v1547_v25, %v1532_v19 }
 0x239   :  { %v1595_v35 = vperm.slane %v1565_v43, 1  ;;  %v1576_v44 = vperm.slane %v1565_v43, 0 }
 0x23b   :  { %v1599_v6 = vmul.f32 %v1595_v35, %v1593_v36 }
 0x23d   :  { %v1560_v14 = vpop.permute.xlu1 %1559 }
 0x23e   :  { %v1561_v48 = vsel %vm3146_vm2, %v1558_v41, %v1560_v14  ;;  %v1564_v58 = vsel %vm3147_vm3, %v1560_v14, %v1554_v57  ;;  %v1548_v41 = vmul.f32 %v1544_v9, %v1539_v45  ;;  %v1550_v57 = vadd.f32 %v1546_v38, %v1531_v63 }
 0x23f   :  { %v1567_v7 = vmul.f32 %v1561_v48, %v3149_v49  ;;  %v1568_v28 = vmul.f32 %v1564_v58, %v3150_v16 }
 0x240   :  { %v1552_v34 = vadd.f32 %v1548_v41, %v1533_v29 }
 0x241   :  { %v1597_v23 = vperm.slane %v1567_v7, 1  ;;  %v1598_v17 = vperm.slane %v1568_v28, 1  ;;  %v1578_v8 = vperm.slane %v1567_v7, 0  ;;  %v1579_v62 = vperm.slane %v1568_v28, 0 }
 0x243   :  { %v1601_v61 = vmul.f32 %v1597_v23, %v1593_v36  ;;  %v1602_v0 = vmul.f32 %v1598_v17, %v1593_v36 }
 0x245   :  { %v1574_v50 = vpop.permute.xlu1 %1573 }
 0x246   :  { %v1580_v37 = vmul.f32 %v1576_v44, %v1574_v50  ;;  %v1581_v26 = vmul.f32 %v1577_v4, %v1574_v50  ;;  %v1582_v1 = vmul.f32 %v1578_v8, %v1574_v50  ;;  %v1583_v54 = vmul.f32 %v1579_v62, %v1574_v50 }
 0x248   :  { %v1584_v59 = vadd.f32 %v1580_v37, %v1549_v39  ;;  %v1585_v33 = vadd.f32 %v1581_v26, %v1550_v57  ;;  %v1586_v40 = vadd.f32 %v1582_v1, %v1551_v13  ;;  %v1587_v53 = vadd.f32 %v1583_v54, %v1552_v34 }
 0x24a   :  { %v1603_v18 = vadd.f32 %v1599_v6, %v1584_v59  ;;  %v1604_v2 = vadd.f32 %v1600_v55, %v1585_v33  ;;  %v1605_v20 = vadd.f32 %v1601_v61, %v1586_v40  ;;  %v1606_v24 = vadd.f32 %v1602_v0, %v1587_v53  ;;  %v1701_v0 = vld.sshfl [vmem:[#allocation1 + $0x8] sm:$0xff pattern:$0x75316420] }
 0x24c   :  { %v3049_v22 = vadd.f32 %v1611_v11, %v1603_v18  ;;  %v3051_v46 = vadd.f32 %v1611_v11, %v1604_v2  ;;  %v3053_v5 = vadd.f32 %v1611_v11, %v1605_v20  ;;  %v3055_v47 = vadd.f32 %v1611_v11, %v1606_v24  ;;  %v1700_v2 = vld.sshfl [vmem:[#allocation1] sm:$0xff pattern:$0x75316420]  ;;  %v1703_v24 = vld.sshfl [vmem:[#allocation1 + $0x18] sm:$0xff pattern:$0x75316420] }
 0x24e   :  { %v1804_v42 = vmul.f32 -1.442695, %v3049_v22  ;;  %v1805_v52 = vmul.f32 -1.442695, %v3051_v46  ;;  %v1806_v51 = vmul.f32 -1.442695, %v3053_v5 }
 0x24f   :  { %v1807_v31 = vmul.f32 -1.442695, %v3055_v47 }
 0x250   :  { %1837 = vpow2.f32 %v1804_v42 }
 0x251   :  { %1839 = vpow2.f32 %v1805_v52 }
 0x252   :  { %1841 = vpow2.f32 %v1806_v51  ;;  %v1702_v51 = vld.sshfl [vmem:[#allocation1 + $0x10] sm:$0xff pattern:$0x75316420] }
 0x253   :  { %1843 = vpow2.f32 %v1807_v31 }
 0x256   :  { %v1838_v30 = vpop.eup %1837 }
 0x257   :  { %v1840_v27 = vpop.eup %1839  ;;  %v1629_v60 = vadd.f32 1.0, %v1838_v30 }
 0x258   :  { %v1842_v14 = vpop.eup %1841  ;;  %v1630_v56 = vadd.f32 1.0, %v1840_v27 }
 0x259   :  { %v1844_v45 = vpop.eup %1843  ;;  %v1631_v10 = vadd.f32 1.0, %v1842_v14  ;;  %1845 = vrcp.f32 %v1629_v60  ;;  %v1642_v58 = vand.u32 2147483647, %v1629_v60  ;;  %v1644_v15 = vand.u32 2147483648, %v1629_v60 }
 0x25a   :  { %v1632_v48 = vadd.f32 1.0, %v1844_v45  ;;  %1847 = vrcp.f32 %v1630_v56  ;;  %vm1638_vm5 = vweird.f32 %v1629_v60  ;;  %vm1653_vm6 = vweird.f32 %v1630_v56 }
 0x25b   :  { %1849 = vrcp.f32 %v1631_v10  ;;  %v1657_v28 = vand.u32 2147483647, %v1630_v56  ;;  %vm3061_vm9 = vcmp.eq.f32.partialorder %v1642_v58, 8.507059e+37  ;;  %v1659_v38 = vand.u32 2147483648, %v1630_v56 }
 0x25c   :  { %1851 = vrcp.f32 %v1632_v48  ;;  %v1645_v32 = vor.u32 1.1754944e-38, %v1644_v15  ;;  %vm1668_vm10 = vweird.f32 %v1631_v10  ;;  %v1672_v25 = vand.u32 2147483647, %v1631_v10 }
 0x25d   :  { %vm3065_vm13 = vcmp.eq.f32.partialorder %v1657_v28, 8.507059e+37  ;;  %v1674_v4 = vand.u32 2147483648, %v1631_v10  ;;  %v1660_v13 = vor.u32 1.1754944e-38, %v1659_v38  ;;  %v1687_v34 = vand.u32 2147483647, %v1632_v48 }
 0x25e   :  { %v1689_v50 = vand.u32 2147483648, %v1632_v48  ;;  %vm1683_vm0 = vweird.f32 %v1632_v48  ;;  %vm1673_vm1 = vcmp.eq.f32.partialorder %v1672_v25, 8.507059e+37 }
 0x25f   :  { %v1846_v9 = vpop.eup %1845  ;;  %v1675_v54 = vor.u32 1.1754944e-38, %v1674_v4  ;;  %vm1688_vm3 = vcmp.eq.f32.partialorder %v1687_v34, 8.507059e+37 }
 0x260   :  { %v1848_v43 = vpop.eup %1847  ;;  %v1634_v49 = vmul.f32 %v1846_v9, %v1629_v60  ;;  %vm1639_vm11 = vweird.f32 %v1846_v9  ;;  %v1690_v33 = vor.u32 1.1754944e-38, %v1689_v50 }
 0x261   :  { %v1850_v7 = vpop.eup %1849  ;;  %v1649_v16 = vmul.f32 %v1848_v43, %v1630_v56  ;;  %vm1654_vm12 = vweird.f32 %v1848_v43  ;;  %vm1640_vm15 = vmor %vm1638_vm5, %vm1639_vm11  ;;  %vm1718_vm5 = vcmask 1043456  }
 0x262   :  { %v1635_v3 = vsub.f32 1.0, %v1634_v49  ;;  %v1664_v19 = vmul.f32 %v1850_v7, %v1631_v10  ;;  %v1852_v29 = vpop.eup %1851  ;;  %vm1669_vm14 = vweird.f32 %v1850_v7  ;;  %vm1655_vm8 = vmor %vm1653_vm6, %vm1654_vm12 }
 0x263   :  { %v1650_v12 = vsub.f32 1.0, %v1649_v16  ;;  %v1679_v35 = vmul.f32 %v1852_v29, %v1632_v48  ;;  %vm1684_vm4 = vweird.f32 %v1852_v29  ;;  %vm1670_vm7 = vmor %vm1668_vm10, %vm1669_vm14 }
 0x264   :  { %v1636_v63 = vmul.f32 %v1846_v9, %v1635_v3  ;;  %v1665_v41 = vsub.f32 1.0, %v1664_v19  ;;  %vm1685_vm2 = vmor %vm1683_vm0, %vm1684_vm4 }
 0x265   :  { %v1651_v23 = vmul.f32 %v1848_v43, %v1650_v12  ;;  %v1680_v62 = vsub.f32 1.0, %v1679_v35 }
 0x266   :  { %v1637_v44 = vadd.f32 %v1846_v9, %v1636_v63  ;;  %v1666_v8 = vmul.f32 %v1850_v7, %v1665_v41 }
 0x267   :  { %v1652_v57 = vadd.f32 %v1848_v43, %v1651_v23  ;;  %v1681_v37 = vmul.f32 %v1852_v29, %v1680_v62 }
 0x268   :  { %v1641_v39 = vsel %vm1640_vm15, %v1846_v9, %v1637_v44  ;;  %v1667_v36 = vadd.f32 %v1850_v7, %v1666_v8 }
 0x269   :  { %v1646_v26 = vsel %vm3061_vm9, %v1645_v32, %v1641_v39  ;;  %v1656_v1 = vsel %vm1655_vm8, %v1848_v43, %v1652_v57  ;;  %v1682_v61 = vadd.f32 %v1852_v29, %v1681_v37 }
 0x26a   :  { %v1661_v55 = vsel %vm3065_vm13, %v1660_v13, %v1656_v1  ;;  %v1671_v6 = vsel %vm1670_vm7, %v1850_v7, %v1667_v36  ;;  %v1693_v40 = vmul.f32 %v1646_v26, %v3049_v22 }
 0x26b   :  { %v1676_v59 = vsel %vm1673_vm1, %v1675_v54, %v1671_v6  ;;  %v1694_v53 = vmul.f32 %v1661_v55, %v3051_v46  ;;  %v1686_v18 = vsel %vm1685_vm2, %v1852_v29, %v1682_v61 }
 0x26c   :  { %v1691_v20 = vsel %vm1688_vm3, %v1690_v33, %v1686_v18  ;;  %v1695_v42 = vmul.f32 %v1676_v59, %v3053_v5  ;;  %v1708_v31 = vadd.f32 %v1700_v2, %v1693_v40 }
 0x26d   :  { %v1709_v11 = vadd.f32 %v1701_v0, %v1694_v53  ;;  %v1696_v52 = vmul.f32 %v1691_v20, %v3055_v47 }
 0x26e   :  { %v1710_v46 = vadd.f32 %v1702_v51, %v1695_v42 }
 0x26f   :  { %v1716_v30 = vrot.slane %v1709_v11, 4  ;;  %v1711_v27 = vadd.f32 %v1703_v24, %v1696_v52 }
 0x271   :  { %v1719_v22 = vsel %vm1718_vm5, %v1708_v31, %v1716_v30  ;;  %v1717_v60 = vrot.slane %v1711_v27, 4 }
 0x272   :  { %1723 = vst [vmem:[#allocation2] sm:$0xff] %v1719_v22 }
 0x273   :  { %v1720_v5 = vsel %vm1718_vm5, %v1710_v46, %v1717_v60 }
 0x274   :  { %1724 = vst [vmem:[#allocation2 + $0x8] sm:$0xff] %v1720_v5 }
 0x275   :  { %1735 = dma.vmem_to_hbm [thread:$0]  %s1731_s14, 256, %s1733_s5, [#allocation3]  }
 0x276   :  { %1877 = dma.done.wait [#allocation3], 256  }
 0x277   :  { %1878 = vsyncadd [#allocation3], 4294967040 }
 0x278   :  { %1740 = vsyncpa [#allocation3], 1 }

</bundles_post_ra>
